<compile_context>
chip_gen: v7x
topology: tpu7x:2x2x1
jax: 0.10.0
libtpu: 0.0.40
codegen_flags: <defaults>
</compile_context>

<pallas_src>
import jax
import jax.numpy as jnp
import numpy as np
from jax import lax
from jax.experimental import pallas as pl
from jax.experimental.pallas import tpu as pltpu


# --------------------------------------------------------------------------- #
# Phase 1: hoisted input projection  gx = x @ Wx + (b_ih + b_hh)
# --------------------------------------------------------------------------- #
def input_proj_kernel(x_ref, wxf_ref, bf_ref, wxb_ref, bb_ref, gxf_ref, gxb_ref):
    x = x_ref[...]                                   # (T*B, I) — large M for the MXU
    gxf_ref[...] = (jnp.dot(x, wxf_ref[...], preferred_element_type=jnp.float32)
                    + bf_ref[...])
    gxb_ref[...] = (jnp.dot(x, wxb_ref[...], preferred_element_type=jnp.float32)
                    + bb_ref[...])


# --------------------------------------------------------------------------- #
# Phase 2: recurrence.  One grid step per direction ("parallel" -> 2 TCs on v7x).
# Time is an in-kernel fori_loop; h/c live in VMEM scratch; outputs are buffered
# in VMEM and flushed with one large store.
# --------------------------------------------------------------------------- #
def lstm_recurrent_kernel(gx_ref, wh_ref, hs_ref, hT_ref, cT_ref,
                          out_buf, h_scr, c_scr):
    T = gx_ref.shape[0]
    H = wh_ref.shape[0]

    h_scr[...] = jnp.zeros_like(h_scr)
    c_scr[...] = jnp.zeros_like(c_scr)
    wh = wh_ref[...]                                 # weights stay resident in vregs/VMEM

    def step(t, carry):
        # gates: (B, 4H); x-projection was precomputed, only h @ Wh is sequential.
        gates = gx_ref[t] + jnp.dot(h_scr[...], wh,
                                    preferred_element_type=jnp.float32)
        i = jax.nn.sigmoid(gates[:, 0 * H:1 * H])
        f = jax.nn.sigmoid(gates[:, 1 * H:2 * H])
        g = jnp.tanh(gates[:, 2 * H:3 * H])
        o = jax.nn.sigmoid(gates[:, 3 * H:4 * H])
        c_new = f * c_scr[...] + i * g
        h_new = o * jnp.tanh(c_new)
        h_scr[...] = h_new
        c_scr[...] = c_new
        out_buf[t] = h_new                           # buffered in VMEM, flushed once below
        return carry

    lax.fori_loop(0, T, step, 0, unroll=True)

    # Single large store of the whole (T, B, H) slab + final states written once.
    hs_ref[...] = out_buf[...]
    hT_ref[...] = h_scr[...]
    cT_ref[...] = c_scr[...]


# --------------------------------------------------------------------------- #
# Wrapper
# --------------------------------------------------------------------------- #
def bilstm_forward(src_feats, params):
    """src_feats: (T, B, I) f32. Returns {'predictions': (T,B,2H), 'hidden': (2,B,2H)}."""
    T, B, I = src_feats.shape
    wx_f, wh_f, b_f, wx_b, wh_b, b_b = params
    H = wh_f.shape[0]
    G = 4 * H

    # ---- phase 1: one big matmul per direction (input streamed once, not twice)
    x2d = src_feats.reshape(T * B, I)
    gx_f, gx_b = pl.pallas_call(
        input_proj_kernel,
        out_shape=(jax.ShapeDtypeStruct((T * B, G), jnp.float32),
                   jax.ShapeDtypeStruct((T * B, G), jnp.float32)),
    )(x2d, wx_f, b_f, wx_b, b_b)

    # Backward direction consumes time-reversed inputs; reverse the precomputed gates
    # here (cheap XLA flip) so the kernel body is direction-agnostic.
    gx_stack = jnp.stack([gx_f.reshape(T, B, G),
                          gx_b.reshape(T, B, G)[::-1]], axis=0)     # (2, T, B, G)
    wh_stack = jnp.stack([wh_f, wh_b], axis=0)                      # (2, H, G)

    hs, hT, cT = pl.pallas_call(
        lstm_recurrent_kernel,
        out_shape=(jax.ShapeDtypeStruct((2, T, B, H), jnp.float32),
                   jax.ShapeDtypeStruct((2, B, H), jnp.float32),
                   jax.ShapeDtypeStruct((2, B, H), jnp.float32)),
        grid_spec=pltpu.PrefetchScalarGridSpec(
            num_scalar_prefetch=0,
            grid=(2,),                               # directions; independent
            in_specs=[
                pl.BlockSpec((None, T, B, G), lambda d: (d, 0, 0, 0)),
                pl.BlockSpec((None, H, G), lambda d: (d, 0, 0)),
            ],
            out_specs=[
                pl.BlockSpec((None, T, B, H), lambda d: (d, 0, 0, 0)),
                pl.BlockSpec((None, B, H), lambda d: (d, 0, 0)),
                pl.BlockSpec((None, B, H), lambda d: (d, 0, 0)),
            ],
            scratch_shapes=[
                pltpu.VMEM((T, B, H), jnp.float32),  # per-direction output slab
                pltpu.VMEM((B, H), jnp.float32),     # h state
                pltpu.VMEM((B, H), jnp.float32),     # c state
            ],
        ),
        compiler_params=pltpu.CompilerParams(
            dimension_semantics=("parallel",)),      # both TCs busy on v7x
    )(gx_stack, wh_stack)

    # glue: assemble PyTorch-equivalent outputs
    out_f = hs[0]                                    # (T, B, H), time order
    out_b = hs[1][::-1]                              # undo time reversal
    predictions = jnp.concatenate([out_f, out_b], axis=-1)          # (T, B, 2H)
    h_cat = jnp.concatenate([hT[0], hT[1]], axis=-1)[None]          # (1, B, 2H)
    c_cat = jnp.concatenate([cT[0], cT[1]], axis=-1)[None]          # (1, B, 2H)
    hidden = jnp.concatenate([h_cat, c_cat], axis=0)                # (2, B, 2H)
    return {'predictions': predictions, 'hidden': hidden}


def init_params(key, input_size, hidden_per_dir):
    """PyTorch-style uniform(-1/sqrt(H), 1/sqrt(H)) init; weights stored transposed
    as (I, 4H) / (H, 4H); bias = b_ih + b_hh folded into a single (1, 4H)."""
    H, I, G = hidden_per_dir, input_size, 4 * hidden_per_dir
    stdv = 1.0 / np.sqrt(H)
    keys = jax.random.split(key, 8)
    u = lambda k, shp: jax.random.uniform(k, shp, jnp.float32, -stdv, stdv)
    wx_f = u(keys[0], (I, G))
    wh_f = u(keys[1], (H, G))
    b_f = (u(keys[2], (1, G)) + u(keys[3], (1, G)))
    wx_b = u(keys[4], (I, G))
    wh_b = u(keys[5], (H, G))
    b_b = (u(keys[6], (1, G)) + u(keys[7], (1, G)))
    return wx_f, wh_f, b_f, wx_b, wh_b, b_b


def lstm_ref_dir(x, wx, wh, b, reverse):
    """Pure-JAX reference for one direction."""
    B = x.shape[1]
    H = wh.shape[0]

    def step(carry, xt):
        h, c = carry
        gates = xt @ wx + h @ wh + b
        i = jax.nn.sigmoid(gates[:, 0 * H:1 * H])
        f = jax.nn.sigmoid(gates[:, 1 * H:2 * H])
        g = jnp.tanh(gates[:, 2 * H:3 * H])
        o = jax.nn.sigmoid(gates[:, 3 * H:4 * H])
        c = f * c + i * g
        h = o * jnp.tanh(c)
        return (h, c), h

    xs = x[::-1] if reverse else x
    (h, c), hs = jax.lax.scan(step, (jnp.zeros((B, H)), jnp.zeros((B, H))), xs)
    hs = hs[::-1] if reverse else hs
    return hs, h, c


if __name__ == "__main__":
    # Small shapes consistent with the module: hidden_size=32 bidirectional -> H=16/dir
    T, B, input_size, hidden_size = 8, 2, 16, 32
    H = hidden_size // 2

    key = jax.random.PRNGKey(0)
    k_x, k_p = jax.random.split(key)
    src_feats = jax.random.normal(k_x, (T, B, input_size), jnp.float32)
    params = init_params(k_p, input_size, H)

    fwd = jax.jit(bilstm_forward)
    out = jax.block_until_ready(fwd(src_feats, params))

    # reference check (pure JAX)
    wx_f, wh_f, b_f, wx_b, wh_b, b_b = params
    hs_f, hf, cf = lstm_ref_dir(src_feats, wx_f, wh_f, b_f, reverse=False)
    hs_b, hb, cb = lstm_ref_dir(src_feats, wx_b, wh_b, b_b, reverse=True)
    pred_ref = jnp.concatenate([hs_f, hs_b], axis=-1)
    hid_ref = jnp.concatenate([
        jnp.concatenate([hf, hb], axis=-1)[None],
        jnp.concatenate([cf, cb], axis=-1)[None]], axis=0)

    assert out['predictions'].shape == (T, B, hidden_size)
    assert out['hidden'].shape == (2, B, hidden_size)
    np.testing.assert_allclose(np.asarray(out['predictions']),
                               np.asarray(pred_ref), atol=1e-4, rtol=1e-4)
    np.testing.assert_allclose(np.asarray(out['hidden']),
                               np.asarray(hid_ref), atol=1e-4, rtol=1e-4)
    print("KERNEL_OK")
</pallas_src>

<mosaic_0001>
module attributes {stable_mosaic.version = 11 : i64} {
  func.func @input_proj_kernel(%arg0: memref<16x16xf32, #tpu.memory_space<vmem>>, %arg1: memref<16x64xf32, #tpu.memory_space<vmem>>, %arg2: memref<1x64xf32, #tpu.memory_space<vmem>>, %arg3: memref<16x64xf32, #tpu.memory_space<vmem>>, %arg4: memref<1x64xf32, #tpu.memory_space<vmem>>, %arg5: memref<16x64xf32, #tpu.memory_space<vmem>>, %arg6: memref<16x64xf32, #tpu.memory_space<vmem>>) attributes {dimension_semantics = [], scalar_prefetch = 0 : i64, scratch_operands = 0 : i64, tpu.core_type = #tpu.core_type<tc>} {
    %c0 = arith.constant 0 : index
    %c0_0 = arith.constant 0 : index
    %0 = vector.load %arg0[%c0, %c0_0] : memref<16x16xf32, #tpu.memory_space<vmem>>, vector<16x16xf32>
    %c0_1 = arith.constant 0 : index
    %c0_2 = arith.constant 0 : index
    %1 = vector.load %arg1[%c0_1, %c0_2] : memref<16x64xf32, #tpu.memory_space<vmem>>, vector<16x64xf32>
    %cst = arith.constant dense<0.000000e+00> : vector<16x64xf32>
    %2 = tpu.matmul %0, %1, %cst {dimension_numbers = #tpu.dot_dimension_numbers<[1], [0], [0], [1], [0, 0, 1, 1], [], []>} : vector<16x16xf32>, vector<16x64xf32>, vector<16x64xf32> -> vector<16x64xf32>
    %c0_3 = arith.constant 0 : index
    %c0_4 = arith.constant 0 : index
    %3 = vector.load %arg2[%c0_3, %c0_4] : memref<1x64xf32, #tpu.memory_space<vmem>>, vector<1x64xf32>
    %4 = vector.broadcast %3 : vector<1x64xf32> to vector<16x64xf32>
    %5 = arith.addf %2, %4 : vector<16x64xf32>
    %c0_5 = arith.constant 0 : index
    %c0_6 = arith.constant 0 : index
    %6 = vector.load %arg5[%c0_5, %c0_6] : memref<16x64xf32, #tpu.memory_space<vmem>>, vector<16x64xf32>
    tpu.vector_store %arg5[%c0_5, %c0_6], %5 {strides = array<i32>} : memref<16x64xf32, #tpu.memory_space<vmem>>, vector<16x64xf32>,
    %c0_7 = arith.constant 0 : index
    %c0_8 = arith.constant 0 : index
    %7 = vector.load %arg3[%c0_7, %c0_8] : memref<16x64xf32, #tpu.memory_space<vmem>>, vector<16x64xf32>
    %cst_9 = arith.constant dense<0.000000e+00> : vector<16x64xf32>
    %8 = tpu.matmul %0, %7, %cst_9 {dimension_numbers = #tpu.dot_dimension_numbers<[1], [0], [0], [1], [0, 0, 1, 1], [], []>} : vector<16x16xf32>, vector<16x64xf32>, vector<16x64xf32> -> vector<16x64xf32>
    %c0_10 = arith.constant 0 : index
    %c0_11 = arith.constant 0 : index
    %9 = vector.load %arg4[%c0_10, %c0_11] : memref<1x64xf32, #tpu.memory_space<vmem>>, vector<1x64xf32>
    %10 = vector.broadcast %9 : vector<1x64xf32> to vector<16x64xf32>
    %11 = arith.addf %8, %10 : vector<16x64xf32>
    %c0_12 = arith.constant 0 : index
    %c0_13 = arith.constant 0 : index
    %12 = vector.load %arg6[%c0_12, %c0_13] : memref<16x64xf32, #tpu.memory_space<vmem>>, vector<16x64xf32>
    tpu.vector_store %arg6[%c0_12, %c0_13], %11 {strides = array<i32>} : memref<16x64xf32, #tpu.memory_space<vmem>>, vector<16x64xf32>,
    return
  }
}

module attributes {stable_mosaic.version = 11 : i64} {
  func.func @lstm_recurrent_kernel(%arg0: i32, %arg1: memref<1x8x2x64xf32, #tpu.memory_space<vmem>>, %arg2: memref<1x16x64xf32, #tpu.memory_space<vmem>>, %arg3: memref<1x8x2x16xf32, #tpu.memory_space<vmem>>, %arg4: memref<1x2x16xf32, #tpu.memory_space<vmem>>, %arg5: memref<1x2x16xf32, #tpu.memory_space<vmem>>, %arg6: memref<8x2x16xf32, #tpu.memory_space<vmem>>, %arg7: memref<2x16xf32, #tpu.memory_space<vmem>>, %arg8: memref<2x16xf32, #tpu.memory_space<vmem>>) attributes {dimension_semantics = [#tpu.dimension_semantics<parallel>], iteration_bounds = array<i64: 2>, scalar_prefetch = 0 : i64, scratch_operands = 3 : i64, tpu.core_type = #tpu.core_type<tc>, window_params = [{transform_indices = @transform_0, window_bounds = array<i64: 1, 8, 2, 64>}, {transform_indices = @transform_1, window_bounds = array<i64: 1, 16, 64>}, {transform_indices = @transform_2, window_bounds = array<i64: 1, 8, 2, 16>}, {transform_indices = @transform_3, window_bounds = array<i64: 1, 2, 16>}, {transform_indices = @transform_4, window_bounds = array<i64: 1, 2, 16>}]} {
    %cst = arith.constant 0.000000e+00 : f32
    %0 = vector.broadcast %cst : f32 to vector<2x16xf32>
    %c0 = arith.constant 0 : index
    %c0_0 = arith.constant 0 : index
    %1 = vector.load %arg7[%c0, %c0_0] : memref<2x16xf32, #tpu.memory_space<vmem>>, vector<2x16xf32>
    tpu.vector_store %arg7[%c0, %c0_0], %0 {strides = array<i32>} : memref<2x16xf32, #tpu.memory_space<vmem>>, vector<2x16xf32>,
    %cst_1 = arith.constant 0.000000e+00 : f32
    %2 = vector.broadcast %cst_1 : f32 to vector<2x16xf32>
    %c0_2 = arith.constant 0 : index
    %c0_3 = arith.constant 0 : index
    %3 = vector.load %arg8[%c0_2, %c0_3] : memref<2x16xf32, #tpu.memory_space<vmem>>, vector<2x16xf32>
    tpu.vector_store %arg8[%c0_2, %c0_3], %2 {strides = array<i32>} : memref<2x16xf32, #tpu.memory_space<vmem>>, vector<2x16xf32>,
    %c0_4 = arith.constant 0 : index
    %c0_5 = arith.constant 0 : index
    %c0_6 = arith.constant 0 : index
    %4 = vector.load %arg2[%c0_4, %c0_5, %c0_6] : memref<1x16x64xf32, #tpu.memory_space<vmem>>, vector<1x16x64xf32>
    %5 = vector.shape_cast %4 : vector<1x16x64xf32> to vector<16x64xf32>
    %c0_i32 = arith.constant 0 : i32
    %c0_7 = arith.constant 0 : index
    %6 = arith.index_cast %c0_i32 : i32 to index
    %c0_8 = arith.constant 0 : index
    %c0_9 = arith.constant 0 : index
    %7 = vector.load %arg1[%c0_7, %6, %c0_8, %c0_9] : memref<1x8x2x64xf32, #tpu.memory_space<vmem>>, vector<1x1x2x64xf32>
    %8 = vector.shape_cast %7 : vector<1x1x2x64xf32> to vector<2x64xf32>
    %c0_10 = arith.constant 0 : index
    %c0_11 = arith.constant 0 : index
    %9 = vector.load %arg7[%c0_10, %c0_11] : memref<2x16xf32, #tpu.memory_space<vmem>>, vector<2x16xf32>
    %cst_12 = arith.constant dense<0.000000e+00> : vector<2x64xf32>
    %10 = tpu.matmul %9, %5, %cst_12 {dimension_numbers = #tpu.dot_dimension_numbers<[1], [0], [0], [1], [0, 0, 1, 1], [], []>} : vector<2x16xf32>, vector<16x64xf32>, vector<2x64xf32> -> vector<2x64xf32>
    %11 = arith.addf %8, %10 : vector<2x64xf32>
    %12 = vector.extract_strided_slice %11 {offsets = [0, 0], sizes = [2, 16], strides = [1, 1]} : vector<2x64xf32> to vector<2x16xf32>
    %13 = arith.negf %12 : vector<2x16xf32>
    %14 = math.exp %13 : vector<2x16xf32>
    %cst_13 = arith.constant 1.000000e+00 : f32
    %15 = vector.broadcast %cst_13 : f32 to vector<2x16xf32>
    %16 = arith.addf %15, %14 : vector<2x16xf32>
    %17 = arith.divf %15, %16 : vector<2x16xf32>
    %18 = vector.extract_strided_slice %11 {offsets = [0, 16], sizes = [2, 16], strides = [1, 1]} : vector<2x64xf32> to vector<2x16xf32>
    %19 = arith.negf %18 : vector<2x16xf32>
    %20 = math.exp %19 : vector<2x16xf32>
    %cst_14 = arith.constant 1.000000e+00 : f32
    %21 = vector.broadcast %cst_14 : f32 to vector<2x16xf32>
    %22 = arith.addf %21, %20 : vector<2x16xf32>
    %23 = arith.divf %21, %22 : vector<2x16xf32>
    %24 = vector.extract_strided_slice %11 {offsets = [0, 32], sizes = [2, 16], strides = [1, 1]} : vector<2x64xf32> to vector<2x16xf32>
    %25 = math.tanh %24 : vector<2x16xf32>
    %26 = vector.extract_strided_slice %11 {offsets = [0, 48], sizes = [2, 16], strides = [1, 1]} : vector<2x64xf32> to vector<2x16xf32>
    %27 = arith.negf %26 : vector<2x16xf32>
    %28 = math.exp %27 : vector<2x16xf32>
    %cst_15 = arith.constant 1.000000e+00 : f32
    %29 = vector.broadcast %cst_15 : f32 to vector<2x16xf32>
    %30 = arith.addf %29, %28 : vector<2x16xf32>
    %31 = arith.divf %29, %30 : vector<2x16xf32>
    %c0_16 = arith.constant 0 : index
    %c0_17 = arith.constant 0 : index
    %32 = vector.load %arg8[%c0_16, %c0_17] : memref<2x16xf32, #tpu.memory_space<vmem>>, vector<2x16xf32>
    %33 = arith.mulf %23, %32 : vector<2x16xf32>
    %34 = arith.mulf %17, %25 : vector<2x16xf32>
    %35 = arith.addf %33, %34 : vector<2x16xf32>
    %36 = math.tanh %35 : vector<2x16xf32>
    %37 = arith.mulf %31, %36 : vector<2x16xf32>
    %c0_18 = arith.constant 0 : index
    %c0_19 = arith.constant 0 : index
    %38 = vector.load %arg7[%c0_18, %c0_19] : memref<2x16xf32, #tpu.memory_space<vmem>>, vector<2x16xf32>
    tpu.vector_store %arg7[%c0_18, %c0_19], %37 {strides = array<i32>} : memref<2x16xf32, #tpu.memory_space<vmem>>, vector<2x16xf32>,
    %c0_20 = arith.constant 0 : index
    %c0_21 = arith.constant 0 : index
    %39 = vector.load %arg8[%c0_20, %c0_21] : memref<2x16xf32, #tpu.memory_space<vmem>>, vector<2x16xf32>
    tpu.vector_store %arg8[%c0_20, %c0_21], %35 {strides = array<i32>} : memref<2x16xf32, #tpu.memory_space<vmem>>, vector<2x16xf32>,
    %40 = arith.index_cast %c0_i32 : i32 to index
    %c0_22 = arith.constant 0 : index
    %c0_23 = arith.constant 0 : index
    %41 = vector.load %arg6[%40, %c0_22, %c0_23] : memref<8x2x16xf32, #tpu.memory_space<vmem>>, vector<1x2x16xf32>
    %42 = vector.shape_cast %41 : vector<1x2x16xf32> to vector<2x16xf32>
    %43 = vector.shape_cast %37 : vector<2x16xf32> to vector<1x2x16xf32>
    tpu.vector_store %arg6[%40, %c0_22, %c0_23], %43 {strides = array<i32>} : memref<8x2x16xf32, #tpu.memory_space<vmem>>, vector<1x2x16xf32>,
    %c1_i32 = arith.constant 1 : i32
    %c0_24 = arith.constant 0 : index
    %44 = arith.index_cast %c1_i32 : i32 to index
    %c0_25 = arith.constant 0 : index
    %c0_26 = arith.constant 0 : index
    %45 = vector.load %arg1[%c0_24, %44, %c0_25, %c0_26] : memref<1x8x2x64xf32, #tpu.memory_space<vmem>>, vector<1x1x2x64xf32>
    %46 = vector.shape_cast %45 : vector<1x1x2x64xf32> to vector<2x64xf32>
    %c0_27 = arith.constant 0 : index
    %c0_28 = arith.constant 0 : index
    %47 = vector.load %arg7[%c0_27, %c0_28] : memref<2x16xf32, #tpu.memory_space<vmem>>, vector<2x16xf32>
    %cst_29 = arith.constant dense<0.000000e+00> : vector<2x64xf32>
    %48 = tpu.matmul %47, %5, %cst_29 {dimension_numbers = #tpu.dot_dimension_numbers<[1], [0], [0], [1], [0, 0, 1, 1], [], []>} : vector<2x16xf32>, vector<16x64xf32>, vector<2x64xf32> -> vector<2x64xf32>
    %49 = arith.addf %46, %48 : vector<2x64xf32>
    %50 = vector.extract_strided_slice %49 {offsets = [0, 0], sizes = [2, 16], strides = [1, 1]} : vector<2x64xf32> to vector<2x16xf32>
    %51 = arith.negf %50 : vector<2x16xf32>
    %52 = math.exp %51 : vector<2x16xf32>
    %cst_30 = arith.constant 1.000000e+00 : f32
    %53 = vector.broadcast %cst_30 : f32 to vector<2x16xf32>
    %54 = arith.addf %53, %52 : vector<2x16xf32>
    %55 = arith.divf %53, %54 : vector<2x16xf32>
    %56 = vector.extract_strided_slice %49 {offsets = [0, 16], sizes = [2, 16], strides = [1, 1]} : vector<2x64xf32> to vector<2x16xf32>
    %57 = arith.negf %56 : vector<2x16xf32>
    %58 = math.exp %57 : vector<2x16xf32>
    %cst_31 = arith.constant 1.000000e+00 : f32
    %59 = vector.broadcast %cst_31 : f32 to vector<2x16xf32>
    %60 = arith.addf %59, %58 : vector<2x16xf32>
    %61 = arith.divf %59, %60 : vector<2x16xf32>
    %62 = vector.extract_strided_slice %49 {offsets = [0, 32], sizes = [2, 16], strides = [1, 1]} : vector<2x64xf32> to vector<2x16xf32>
    %63 = math.tanh %62 : vector<2x16xf32>
    %64 = vector.extract_strided_slice %49 {offsets = [0, 48], sizes = [2, 16], strides = [1, 1]} : vector<2x64xf32> to vector<2x16xf32>
    %65 = arith.negf %64 : vector<2x16xf32>
    %66 = math.exp %65 : vector<2x16xf32>
    %cst_32 = arith.constant 1.000000e+00 : f32
    %67 = vector.broadcast %cst_32 : f32 to vector<2x16xf32>
    %68 = arith.addf %67, %66 : vector<2x16xf32>
    %69 = arith.divf %67, %68 : vector<2x16xf32>
    %c0_33 = arith.constant 0 : index
    %c0_34 = arith.constant 0 : index
    %70 = vector.load %arg8[%c0_33, %c0_34] : memref<2x16xf32, #tpu.memory_space<vmem>>, vector<2x16xf32>
    %71 = arith.mulf %61, %70 : vector<2x16xf32>
    %72 = arith.mulf %55, %63 : vector<2x16xf32>
    %73 = arith.addf %71, %72 : vector<2x16xf32>
    %74 = math.tanh %73 : vector<2x16xf32>
    %75 = arith.mulf %69, %74 : vector<2x16xf32>
    %c0_35 = arith.constant 0 : index
    %c0_36 = arith.constant 0 : index
    %76 = vector.load %arg7[%c0_35, %c0_36] : memref<2x16xf32, #tpu.memory_space<vmem>>, vector<2x16xf32>
    tpu.vector_store %arg7[%c0_35, %c0_36], %75 {strides = array<i32>} : memref<2x16xf32, #tpu.memory_space<vmem>>, vector<2x16xf32>,
    %c0_37 = arith.constant 0 : index
    %c0_38 = arith.constant 0 : index
    %77 = vector.load %arg8[%c0_37, %c0_38] : memref<2x16xf32, #tpu.memory_space<vmem>>, vector<2x16xf32>
    tpu.vector_store %arg8[%c0_37, %c0_38], %73 {strides = array<i32>} : memref<2x16xf32, #tpu.memory_space<vmem>>, vector<2x16xf32>,
    %78 = arith.index_cast %c1_i32 : i32 to index
    %c0_39 = arith.constant 0 : index
    %c0_40 = arith.constant 0 : index
    %79 = vector.load %arg6[%78, %c0_39, %c0_40] : memref<8x2x16xf32, #tpu.memory_space<vmem>>, vector<1x2x16xf32>
    %80 = vector.shape_cast %79 : vector<1x2x16xf32> to vector<2x16xf32>
    %81 = vector.shape_cast %75 : vector<2x16xf32> to vector<1x2x16xf32>
    tpu.vector_store %arg6[%78, %c0_39, %c0_40], %81 {strides = array<i32>} : memref<8x2x16xf32, #tpu.memory_space<vmem>>, vector<1x2x16xf32>,
    %c2_i32 = arith.constant 2 : i32
    %c0_41 = arith.constant 0 : index
    %82 = arith.index_cast %c2_i32 : i32 to index
    %c0_42 = arith.constant 0 : index
    %c0_43 = arith.constant 0 : index
    %83 = vector.load %arg1[%c0_41, %82, %c0_42, %c0_43] : memref<1x8x2x64xf32, #tpu.memory_space<vmem>>, vector<1x1x2x64xf32>
    %84 = vector.shape_cast %83 : vector<1x1x2x64xf32> to vector<2x64xf32>
    %c0_44 = arith.constant 0 : index
    %c0_45 = arith.constant 0 : index
    %85 = vector.load %arg7[%c0_44, %c0_45] : memref<2x16xf32, #tpu.memory_space<vmem>>, vector<2x16xf32>
    %cst_46 = arith.constant dense<0.000000e+00> : vector<2x64xf32>
    %86 = tpu.matmul %85, %5, %cst_46 {dimension_numbers = #tpu.dot_dimension_numbers<[1], [0], [0], [1], [0, 0, 1, 1], [], []>} : vector<2x16xf32>, vector<16x64xf32>, vector<2x64xf32> -> vector<2x64xf32>
    %87 = arith.addf %84, %86 : vector<2x64xf32>
    %88 = vector.extract_strided_slice %87 {offsets = [0, 0], sizes = [2, 16], strides = [1, 1]} : vector<2x64xf32> to vector<2x16xf32>
    %89 = arith.negf %88 : vector<2x16xf32>
    %90 = math.exp %89 : vector<2x16xf32>
    %cst_47 = arith.constant 1.000000e+00 : f32
    %91 = vector.broadcast %cst_47 : f32 to vector<2x16xf32>
    %92 = arith.addf %91, %90 : vector<2x16xf32>
    %93 = arith.divf %91, %92 : vector<2x16xf32>
    %94 = vector.extract_strided_slice %87 {offsets = [0, 16], sizes = [2, 16], strides = [1, 1]} : vector<2x64xf32> to vector<2x16xf32>
    %95 = arith.negf %94 : vector<2x16xf32>
    %96 = math.exp %95 : vector<2x16xf32>
    %cst_48 = arith.constant 1.000000e+00 : f32
    %97 = vector.broadcast %cst_48 : f32 to vector<2x16xf32>
    %98 = arith.addf %97, %96 : vector<2x16xf32>
    %99 = arith.divf %97, %98 : vector<2x16xf32>
    %100 = vector.extract_strided_slice %87 {offsets = [0, 32], sizes = [2, 16], strides = [1, 1]} : vector<2x64xf32> to vector<2x16xf32>
    %101 = math.tanh %100 : vector<2x16xf32>
    %102 = vector.extract_strided_slice %87 {offsets = [0, 48], sizes = [2, 16], strides = [1, 1]} : vector<2x64xf32> to vector<2x16xf32>
    %103 = arith.negf %102 : vector<2x16xf32>
    %104 = math.exp %103 : vector<2x16xf32>
    %cst_49 = arith.constant 1.000000e+00 : f32
    %105 = vector.broadcast %cst_49 : f32 to vector<2x16xf32>
    %106 = arith.addf %105, %104 : vector<2x16xf32>
    %107 = arith.divf %105, %106 : vector<2x16xf32>
    %c0_50 = arith.constant 0 : index
    %c0_51 = arith.constant 0 : index
    %108 = vector.load %arg8[%c0_50, %c0_51] : memref<2x16xf32, #tpu.memory_space<vmem>>, vector<2x16xf32>
    %109 = arith.mulf %99, %108 : vector<2x16xf32>
    %110 = arith.mulf %93, %101 : vector<2x16xf32>
    %111 = arith.addf %109, %110 : vector<2x16xf32>
    %112 = math.tanh %111 : vector<2x16xf32>
    %113 = arith.mulf %107, %112 : vector<2x16xf32>
    %c0_52 = arith.constant 0 : index
    %c0_53 = arith.constant 0 : index
    %114 = vector.load %arg7[%c0_52, %c0_53] : memref<2x16xf32, #tpu.memory_space<vmem>>, vector<2x16xf32>
    tpu.vector_store %arg7[%c0_52, %c0_53], %113 {strides = array<i32>} : memref<2x16xf32, #tpu.memory_space<vmem>>, vector<2x16xf32>,
    %c0_54 = arith.constant 0 : index
    %c0_55 = arith.constant 0 : index
    %115 = vector.load %arg8[%c0_54, %c0_55] : memref<2x16xf32, #tpu.memory_space<vmem>>, vector<2x16xf32>
    tpu.vector_store %arg8[%c0_54, %c0_55], %111 {strides = array<i32>} : memref<2x16xf32, #tpu.memory_space<vmem>>, vector<2x16xf32>,
    %116 = arith.index_cast %c2_i32 : i32 to index
    %c0_56 = arith.constant 0 : index
    %c0_57 = arith.constant 0 : index
    %117 = vector.load %arg6[%116, %c0_56, %c0_57] : memref<8x2x16xf32, #tpu.memory_space<vmem>>, vector<1x2x16xf32>
    %118 = vector.shape_cast %117 : vector<1x2x16xf32> to vector<2x16xf32>
    %119 = vector.shape_cast %113 : vector<2x16xf32> to vector<1x2x16xf32>
    tpu.vector_store %arg6[%116, %c0_56, %c0_57], %119 {strides = array<i32>} : memref<8x2x16xf32, #tpu.memory_space<vmem>>, vector<1x2x16xf32>,
    %c3_i32 = arith.constant 3 : i32
    %c0_58 = arith.constant 0 : index
    %120 = arith.index_cast %c3_i32 : i32 to index
    %c0_59 = arith.constant 0 : index
    %c0_60 = arith.constant 0 : index
    %121 = vector.load %arg1[%c0_58, %120, %c0_59, %c0_60] : memref<1x8x2x64xf32, #tpu.memory_space<vmem>>, vector<1x1x2x64xf32>
    %122 = vector.shape_cast %121 : vector<1x1x2x64xf32> to vector<2x64xf32>
    %c0_61 = arith.constant 0 : index
    %c0_62 = arith.constant 0 : index
    %123 = vector.load %arg7[%c0_61, %c0_62] : memref<2x16xf32, #tpu.memory_space<vmem>>, vector<2x16xf32>
    %cst_63 = arith.constant dense<0.000000e+00> : vector<2x64xf32>
    %124 = tpu.matmul %123, %5, %cst_63 {dimension_numbers = #tpu.dot_dimension_numbers<[1], [0], [0], [1], [0, 0, 1, 1], [], []>} : vector<2x16xf32>, vector<16x64xf32>, vector<2x64xf32> -> vector<2x64xf32>
    %125 = arith.addf %122, %124 : vector<2x64xf32>
    %126 = vector.extract_strided_slice %125 {offsets = [0, 0], sizes = [2, 16], strides = [1, 1]} : vector<2x64xf32> to vector<2x16xf32>
    %127 = arith.negf %126 : vector<2x16xf32>
    %128 = math.exp %127 : vector<2x16xf32>
    %cst_64 = arith.constant 1.000000e+00 : f32
    %129 = vector.broadcast %cst_64 : f32 to vector<2x16xf32>
    %130 = arith.addf %129, %128 : vector<2x16xf32>
    %131 = arith.divf %129, %130 : vector<2x16xf32>
    %132 = vector.extract_strided_slice %125 {offsets = [0, 16], sizes = [2, 16], strides = [1, 1]} : vector<2x64xf32> to vector<2x16xf32>
    %133 = arith.negf %132 : vector<2x16xf32>
    %134 = math.exp %133 : vector<2x16xf32>
    %cst_65 = arith.constant 1.000000e+00 : f32
    %135 = vector.broadcast %cst_65 : f32 to vector<2x16xf32>
    %136 = arith.addf %135, %134 : vector<2x16xf32>
    %137 = arith.divf %135, %136 : vector<2x16xf32>
    %138 = vector.extract_strided_slice %125 {offsets = [0, 32], sizes = [2, 16], strides = [1, 1]} : vector<2x64xf32> to vector<2x16xf32>
    %139 = math.tanh %138 : vector<2x16xf32>
    %140 = vector.extract_strided_slice %125 {offsets = [0, 48], sizes = [2, 16], strides = [1, 1]} : vector<2x64xf32> to vector<2x16xf32>
    %141 = arith.negf %140 : vector<2x16xf32>
    %142 = math.exp %141 : vector<2x16xf32>
    %cst_66 = arith.constant 1.000000e+00 : f32
    %143 = vector.broadcast %cst_66 : f32 to vector<2x16xf32>
    %144 = arith.addf %143, %142 : vector<2x16xf32>
    %145 = arith.divf %143, %144 : vector<2x16xf32>
    %c0_67 = arith.constant 0 : index
    %c0_68 = arith.constant 0 : index
    %146 = vector.load %arg8[%c0_67, %c0_68] : memref<2x16xf32, #tpu.memory_space<vmem>>, vector<2x16xf32>
    %147 = arith.mulf %137, %146 : vector<2x16xf32>
    %148 = arith.mulf %131, %139 : vector<2x16xf32>
    %149 = arith.addf %147, %148 : vector<2x16xf32>
    %150 = math.tanh %149 : vector<2x16xf32>
    %151 = arith.mulf %145, %150 : vector<2x16xf32>
    %c0_69 = arith.constant 0 : index
    %c0_70 = arith.constant 0 : index
    %152 = vector.load %arg7[%c0_69, %c0_70] : memref<2x16xf32, #tpu.memory_space<vmem>>, vector<2x16xf32>
    tpu.vector_store %arg7[%c0_69, %c0_70], %151 {strides = array<i32>} : memref<2x16xf32, #tpu.memory_space<vmem>>, vector<2x16xf32>,
    %c0_71 = arith.constant 0 : index
    %c0_72 = arith.constant 0 : index
    %153 = vector.load %arg8[%c0_71, %c0_72] : memref<2x16xf32, #tpu.memory_space<vmem>>, vector<2x16xf32>
    tpu.vector_store %arg8[%c0_71, %c0_72], %149 {strides = array<i32>} : memref<2x16xf32, #tpu.memory_space<vmem>>, vector<2x16xf32>,
    %154 = arith.index_cast %c3_i32 : i32 to index
    %c0_73 = arith.constant 0 : index
    %c0_74 = arith.constant 0 : index
    %155 = vector.load %arg6[%154, %c0_73, %c0_74] : memref<8x2x16xf32, #tpu.memory_space<vmem>>, vector<1x2x16xf32>
    %156 = vector.shape_cast %155 : vector<1x2x16xf32> to vector<2x16xf32>
    %157 = vector.shape_cast %151 : vector<2x16xf32> to vector<1x2x16xf32>
    tpu.vector_store %arg6[%154, %c0_73, %c0_74], %157 {strides = array<i32>} : memref<8x2x16xf32, #tpu.memory_space<vmem>>, vector<1x2x16xf32>,
    %c4_i32 = arith.constant 4 : i32
    %c0_75 = arith.constant 0 : index
    %158 = arith.index_cast %c4_i32 : i32 to index
    %c0_76 = arith.constant 0 : index
    %c0_77 = arith.constant 0 : index
    %159 = vector.load %arg1[%c0_75, %158, %c0_76, %c0_77] : memref<1x8x2x64xf32, #tpu.memory_space<vmem>>, vector<1x1x2x64xf32>
    %160 = vector.shape_cast %159 : vector<1x1x2x64xf32> to vector<2x64xf32>
    %c0_78 = arith.constant 0 : index
    %c0_79 = arith.constant 0 : index
    %161 = vector.load %arg7[%c0_78, %c0_79] : memref<2x16xf32, #tpu.memory_space<vmem>>, vector<2x16xf32>
    %cst_80 = arith.constant dense<0.000000e+00> : vector<2x64xf32>
    %162 = tpu.matmul %161, %5, %cst_80 {dimension_numbers = #tpu.dot_dimension_numbers<[1], [0], [0], [1], [0, 0, 1, 1], [], []>} : vector<2x16xf32>, vector<16x64xf32>, vector<2x64xf32> -> vector<2x64xf32>
    %163 = arith.addf %160, %162 : vector<2x64xf32>
    %164 = vector.extract_strided_slice %163 {offsets = [0, 0], sizes = [2, 16], strides = [1, 1]} : vector<2x64xf32> to vector<2x16xf32>
    %165 = arith.negf %164 : vector<2x16xf32>
    %166 = math.exp %165 : vector<2x16xf32>
    %cst_81 = arith.constant 1.000000e+00 : f32
    %167 = vector.broadcast %cst_81 : f32 to vector<2x16xf32>
    %168 = arith.addf %167, %166 : vector<2x16xf32>
    %169 = arith.divf %167, %168 : vector<2x16xf32>
    %170 = vector.extract_strided_slice %163 {offsets = [0, 16], sizes = [2, 16], strides = [1, 1]} : vector<2x64xf32> to vector<2x16xf32>
    %171 = arith.negf %170 : vector<2x16xf32>
    %172 = math.exp %171 : vector<2x16xf32>
    %cst_82 = arith.constant 1.000000e+00 : f32
    %173 = vector.broadcast %cst_82 : f32 to vector<2x16xf32>
    %174 = arith.addf %173, %172 : vector<2x16xf32>
    %175 = arith.divf %173, %174 : vector<2x16xf32>
    %176 = vector.extract_strided_slice %163 {offsets = [0, 32], sizes = [2, 16], strides = [1, 1]} : vector<2x64xf32> to vector<2x16xf32>
    %177 = math.tanh %176 : vector<2x16xf32>
    %178 = vector.extract_strided_slice %163 {offsets = [0, 48], sizes = [2, 16], strides = [1, 1]} : vector<2x64xf32> to vector<2x16xf32>
    %179 = arith.negf %178 : vector<2x16xf32>
    %180 = math.exp %179 : vector<2x16xf32>
    %cst_83 = arith.constant 1.000000e+00 : f32
    %181 = vector.broadcast %cst_83 : f32 to vector<2x16xf32>
    %182 = arith.addf %181, %180 : vector<2x16xf32>
    %183 = arith.divf %181, %182 : vector<2x16xf32>
    %c0_84 = arith.constant 0 : index
    %c0_85 = arith.constant 0 : index
    %184 = vector.load %arg8[%c0_84, %c0_85] : memref<2x16xf32, #tpu.memory_space<vmem>>, vector<2x16xf32>
    %185 = arith.mulf %175, %184 : vector<2x16xf32>
    %186 = arith.mulf %169, %177 : vector<2x16xf32>
    %187 = arith.addf %185, %186 : vector<2x16xf32>
    %188 = math.tanh %187 : vector<2x16xf32>
    %189 = arith.mulf %183, %188 : vector<2x16xf32>
    %c0_86 = arith.constant 0 : index
    %c0_87 = arith.constant 0 : index
    %190 = vector.load %arg7[%c0_86, %c0_87] : memref<2x16xf32, #tpu.memory_space<vmem>>, vector<2x16xf32>
    tpu.vector_store %arg7[%c0_86, %c0_87], %189 {strides = array<i32>} : memref<2x16xf32, #tpu.memory_space<vmem>>, vector<2x16xf32>,
    %c0_88 = arith.constant 0 : index
    %c0_89 = arith.constant 0 : index
    %191 = vector.load %arg8[%c0_88, %c0_89] : memref<2x16xf32, #tpu.memory_space<vmem>>, vector<2x16xf32>
    tpu.vector_store %arg8[%c0_88, %c0_89], %187 {strides = array<i32>} : memref<2x16xf32, #tpu.memory_space<vmem>>, vector<2x16xf32>,
    %192 = arith.index_cast %c4_i32 : i32 to index
    %c0_90 = arith.constant 0 : index
    %c0_91 = arith.constant 0 : index
    %193 = vector.load %arg6[%192, %c0_90, %c0_91] : memref<8x2x16xf32, #tpu.memory_space<vmem>>, vector<1x2x16xf32>
    %194 = vector.shape_cast %193 : vector<1x2x16xf32> to vector<2x16xf32>
    %195 = vector.shape_cast %189 : vector<2x16xf32> to vector<1x2x16xf32>
    tpu.vector_store %arg6[%192, %c0_90, %c0_91], %195 {strides = array<i32>} : memref<8x2x16xf32, #tpu.memory_space<vmem>>, vector<1x2x16xf32>,
    %c5_i32 = arith.constant 5 : i32
    %c0_92 = arith.constant 0 : index
    %196 = arith.index_cast %c5_i32 : i32 to index
    %c0_93 = arith.constant 0 : index
    %c0_94 = arith.constant 0 : index
    %197 = vector.load %arg1[%c0_92, %196, %c0_93, %c0_94] : memref<1x8x2x64xf32, #tpu.memory_space<vmem>>, vector<1x1x2x64xf32>
    %198 = vector.shape_cast %197 : vector<1x1x2x64xf32> to vector<2x64xf32>
    %c0_95 = arith.constant 0 : index
    %c0_96 = arith.constant 0 : index
    %199 = vector.load %arg7[%c0_95, %c0_96] : memref<2x16xf32, #tpu.memory_space<vmem>>, vector<2x16xf32>
    %cst_97 = arith.constant dense<0.000000e+00> : vector<2x64xf32>
    %200 = tpu.matmul %199, %5, %cst_97 {dimension_numbers = #tpu.dot_dimension_numbers<[1], [0], [0], [1], [0, 0, 1, 1], [], []>} : vector<2x16xf32>, vector<16x64xf32>, vector<2x64xf32> -> vector<2x64xf32>
    %201 = arith.addf %198, %200 : vector<2x64xf32>
    %202 = vector.extract_strided_slice %201 {offsets = [0, 0], sizes = [2, 16], strides = [1, 1]} : vector<2x64xf32> to vector<2x16xf32>
    %203 = arith.negf %202 : vector<2x16xf32>
    %204 = math.exp %203 : vector<2x16xf32>
    %cst_98 = arith.constant 1.000000e+00 : f32
    %205 = vector.broadcast %cst_98 : f32 to vector<2x16xf32>
    %206 = arith.addf %205, %204 : vector<2x16xf32>
    %207 = arith.divf %205, %206 : vector<2x16xf32>
    %208 = vector.extract_strided_slice %201 {offsets = [0, 16], sizes = [2, 16], strides = [1, 1]} : vector<2x64xf32> to vector<2x16xf32>
    %209 = arith.negf %208 : vector<2x16xf32>
    %210 = math.exp %209 : vector<2x16xf32>
    %cst_99 = arith.constant 1.000000e+00 : f32
    %211 = vector.broadcast %cst_99 : f32 to vector<2x16xf32>
    %212 = arith.addf %211, %210 : vector<2x16xf32>
    %213 = arith.divf %211, %212 : vector<2x16xf32>
    %214 = vector.extract_strided_slice %201 {offsets = [0, 32], sizes = [2, 16], strides = [1, 1]} : vector<2x64xf32> to vector<2x16xf32>
    %215 = math.tanh %214 : vector<2x16xf32>
    %216 = vector.extract_strided_slice %201 {offsets = [0, 48], sizes = [2, 16], strides = [1, 1]} : vector<2x64xf32> to vector<2x16xf32>
    %217 = arith.negf %216 : vector<2x16xf32>
    %218 = math.exp %217 : vector<2x16xf32>
    %cst_100 = arith.constant 1.000000e+00 : f32
    %219 = vector.broadcast %cst_100 : f32 to vector<2x16xf32>
    %220 = arith.addf %219, %218 : vector<2x16xf32>
    %221 = arith.divf %219, %220 : vector<2x16xf32>
    %c0_101 = arith.constant 0 : index
    %c0_102 = arith.constant 0 : index
    %222 = vector.load %arg8[%c0_101, %c0_102] : memref<2x16xf32, #tpu.memory_space<vmem>>, vector<2x16xf32>
    %223 = arith.mulf %213, %222 : vector<2x16xf32>
    %224 = arith.mulf %207, %215 : vector<2x16xf32>
    %225 = arith.addf %223, %224 : vector<2x16xf32>
    %226 = math.tanh %225 : vector<2x16xf32>
    %227 = arith.mulf %221, %226 : vector<2x16xf32>
    %c0_103 = arith.constant 0 : index
    %c0_104 = arith.constant 0 : index
    %228 = vector.load %arg7[%c0_103, %c0_104] : memref<2x16xf32, #tpu.memory_space<vmem>>, vector<2x16xf32>
    tpu.vector_store %arg7[%c0_103, %c0_104], %227 {strides = array<i32>} : memref<2x16xf32, #tpu.memory_space<vmem>>, vector<2x16xf32>,
    %c0_105 = arith.constant 0 : index
    %c0_106 = arith.constant 0 : index
    %229 = vector.load %arg8[%c0_105, %c0_106] : memref<2x16xf32, #tpu.memory_space<vmem>>, vector<2x16xf32>
    tpu.vector_store %arg8[%c0_105, %c0_106], %225 {strides = array<i32>} : memref<2x16xf32, #tpu.memory_space<vmem>>, vector<2x16xf32>,
    %230 = arith.index_cast %c5_i32 : i32 to index
    %c0_107 = arith.constant 0 : index
    %c0_108 = arith.constant 0 : index
    %231 = vector.load %arg6[%230, %c0_107, %c0_108] : memref<8x2x16xf32, #tpu.memory_space<vmem>>, vector<1x2x16xf32>
    %232 = vector.shape_cast %231 : vector<1x2x16xf32> to vector<2x16xf32>
    %233 = vector.shape_cast %227 : vector<2x16xf32> to vector<1x2x16xf32>
    tpu.vector_store %arg6[%230, %c0_107, %c0_108], %233 {strides = array<i32>} : memref<8x2x16xf32, #tpu.memory_space<vmem>>, vector<1x2x16xf32>,
    %c6_i32 = arith.constant 6 : i32
    %c0_109 = arith.constant 0 : index
    %234 = arith.index_cast %c6_i32 : i32 to index
    %c0_110 = arith.constant 0 : index
    %c0_111 = arith.constant 0 : index
    %235 = vector.load %arg1[%c0_109, %234, %c0_110, %c0_111] : memref<1x8x2x64xf32, #tpu.memory_space<vmem>>, vector<1x1x2x64xf32>
    %236 = vector.shape_cast %235 : vector<1x1x2x64xf32> to vector<2x64xf32>
    %c0_112 = arith.constant 0 : index
    %c0_113 = arith.constant 0 : index
    %237 = vector.load %arg7[%c0_112, %c0_113] : memref<2x16xf32, #tpu.memory_space<vmem>>, vector<2x16xf32>
    %cst_114 = arith.constant dense<0.000000e+00> : vector<2x64xf32>
    %238 = tpu.matmul %237, %5, %cst_114 {dimension_numbers = #tpu.dot_dimension_numbers<[1], [0], [0], [1], [0, 0, 1, 1], [], []>} : vector<2x16xf32>, vector<16x64xf32>, vector<2x64xf32> -> vector<2x64xf32>
    %239 = arith.addf %236, %238 : vector<2x64xf32>
    %240 = vector.extract_strided_slice %239 {offsets = [0, 0], sizes = [2, 16], strides = [1, 1]} : vector<2x64xf32> to vector<2x16xf32>
    %241 = arith.negf %240 : vector<2x16xf32>
    %242 = math.exp %241 : vector<2x16xf32>
    %cst_115 = arith.constant 1.000000e+00 : f32
    %243 = vector.broadcast %cst_115 : f32 to vector<2x16xf32>
    %244 = arith.addf %243, %242 : vector<2x16xf32>
    %245 = arith.divf %243, %244 : vector<2x16xf32>
    %246 = vector.extract_strided_slice %239 {offsets = [0, 16], sizes = [2, 16], strides = [1, 1]} : vector<2x64xf32> to vector<2x16xf32>
    %247 = arith.negf %246 : vector<2x16xf32>
    %248 = math.exp %247 : vector<2x16xf32>
    %cst_116 = arith.constant 1.000000e+00 : f32
    %249 = vector.broadcast %cst_116 : f32 to vector<2x16xf32>
    %250 = arith.addf %249, %248 : vector<2x16xf32>
    %251 = arith.divf %249, %250 : vector<2x16xf32>
    %252 = vector.extract_strided_slice %239 {offsets = [0, 32], sizes = [2, 16], strides = [1, 1]} : vector<2x64xf32> to vector<2x16xf32>
    %253 = math.tanh %252 : vector<2x16xf32>
    %254 = vector.extract_strided_slice %239 {offsets = [0, 48], sizes = [2, 16], strides = [1, 1]} : vector<2x64xf32> to vector<2x16xf32>
    %255 = arith.negf %254 : vector<2x16xf32>
    %256 = math.exp %255 : vector<2x16xf32>
    %cst_117 = arith.constant 1.000000e+00 : f32
    %257 = vector.broadcast %cst_117 : f32 to vector<2x16xf32>
    %258 = arith.addf %257, %256 : vector<2x16xf32>
    %259 = arith.divf %257, %258 : vector<2x16xf32>
    %c0_118 = arith.constant 0 : index
    %c0_119 = arith.constant 0 : index
    %260 = vector.load %arg8[%c0_118, %c0_119] : memref<2x16xf32, #tpu.memory_space<vmem>>, vector<2x16xf32>
    %261 = arith.mulf %251, %260 : vector<2x16xf32>
    %262 = arith.mulf %245, %253 : vector<2x16xf32>
    %263 = arith.addf %261, %262 : vector<2x16xf32>
    %264 = math.tanh %263 : vector<2x16xf32>
    %265 = arith.mulf %259, %264 : vector<2x16xf32>
    %c0_120 = arith.constant 0 : index
    %c0_121 = arith.constant 0 : index
    %266 = vector.load %arg7[%c0_120, %c0_121] : memref<2x16xf32, #tpu.memory_space<vmem>>, vector<2x16xf32>
    tpu.vector_store %arg7[%c0_120, %c0_121], %265 {strides = array<i32>} : memref<2x16xf32, #tpu.memory_space<vmem>>, vector<2x16xf32>,
    %c0_122 = arith.constant 0 : index
    %c0_123 = arith.constant 0 : index
    %267 = vector.load %arg8[%c0_122, %c0_123] : memref<2x16xf32, #tpu.memory_space<vmem>>, vector<2x16xf32>
    tpu.vector_store %arg8[%c0_122, %c0_123], %263 {strides = array<i32>} : memref<2x16xf32, #tpu.memory_space<vmem>>, vector<2x16xf32>,
    %268 = arith.index_cast %c6_i32 : i32 to index
    %c0_124 = arith.constant 0 : index
    %c0_125 = arith.constant 0 : index
    %269 = vector.load %arg6[%268, %c0_124, %c0_125] : memref<8x2x16xf32, #tpu.memory_space<vmem>>, vector<1x2x16xf32>
    %270 = vector.shape_cast %269 : vector<1x2x16xf32> to vector<2x16xf32>
    %271 = vector.shape_cast %265 : vector<2x16xf32> to vector<1x2x16xf32>
    tpu.vector_store %arg6[%268, %c0_124, %c0_125], %271 {strides = array<i32>} : memref<8x2x16xf32, #tpu.memory_space<vmem>>, vector<1x2x16xf32>,
    %c7_i32 = arith.constant 7 : i32
    %c0_126 = arith.constant 0 : index
    %272 = arith.index_cast %c7_i32 : i32 to index
    %c0_127 = arith.constant 0 : index
    %c0_128 = arith.constant 0 : index
    %273 = vector.load %arg1[%c0_126, %272, %c0_127, %c0_128] : memref<1x8x2x64xf32, #tpu.memory_space<vmem>>, vector<1x1x2x64xf32>
    %274 = vector.shape_cast %273 : vector<1x1x2x64xf32> to vector<2x64xf32>
    %c0_129 = arith.constant 0 : index
    %c0_130 = arith.constant 0 : index
    %275 = vector.load %arg7[%c0_129, %c0_130] : memref<2x16xf32, #tpu.memory_space<vmem>>, vector<2x16xf32>
    %cst_131 = arith.constant dense<0.000000e+00> : vector<2x64xf32>
    %276 = tpu.matmul %275, %5, %cst_131 {dimension_numbers = #tpu.dot_dimension_numbers<[1], [0], [0], [1], [0, 0, 1, 1], [], []>} : vector<2x16xf32>, vector<16x64xf32>, vector<2x64xf32> -> vector<2x64xf32>
    %277 = arith.addf %274, %276 : vector<2x64xf32>
    %278 = vector.extract_strided_slice %277 {offsets = [0, 0], sizes = [2, 16], strides = [1, 1]} : vector<2x64xf32> to vector<2x16xf32>
    %279 = arith.negf %278 : vector<2x16xf32>
    %280 = math.exp %279 : vector<2x16xf32>
    %cst_132 = arith.constant 1.000000e+00 : f32
    %281 = vector.broadcast %cst_132 : f32 to vector<2x16xf32>
    %282 = arith.addf %281, %280 : vector<2x16xf32>
    %283 = arith.divf %281, %282 : vector<2x16xf32>
    %284 = vector.extract_strided_slice %277 {offsets = [0, 16], sizes = [2, 16], strides = [1, 1]} : vector<2x64xf32> to vector<2x16xf32>
    %285 = arith.negf %284 : vector<2x16xf32>
    %286 = math.exp %285 : vector<2x16xf32>
    %cst_133 = arith.constant 1.000000e+00 : f32
    %287 = vector.broadcast %cst_133 : f32 to vector<2x16xf32>
    %288 = arith.addf %287, %286 : vector<2x16xf32>
    %289 = arith.divf %287, %288 : vector<2x16xf32>
    %290 = vector.extract_strided_slice %277 {offsets = [0, 32], sizes = [2, 16], strides = [1, 1]} : vector<2x64xf32> to vector<2x16xf32>
    %291 = math.tanh %290 : vector<2x16xf32>
    %292 = vector.extract_strided_slice %277 {offsets = [0, 48], sizes = [2, 16], strides = [1, 1]} : vector<2x64xf32> to vector<2x16xf32>
    %293 = arith.negf %292 : vector<2x16xf32>
    %294 = math.exp %293 : vector<2x16xf32>
    %cst_134 = arith.constant 1.000000e+00 : f32
    %295 = vector.broadcast %cst_134 : f32 to vector<2x16xf32>
    %296 = arith.addf %295, %294 : vector<2x16xf32>
    %297 = arith.divf %295, %296 : vector<2x16xf32>
    %c0_135 = arith.constant 0 : index
    %c0_136 = arith.constant 0 : index
    %298 = vector.load %arg8[%c0_135, %c0_136] : memref<2x16xf32, #tpu.memory_space<vmem>>, vector<2x16xf32>
    %299 = arith.mulf %289, %298 : vector<2x16xf32>
    %300 = arith.mulf %283, %291 : vector<2x16xf32>
    %301 = arith.addf %299, %300 : vector<2x16xf32>
    %302 = math.tanh %301 : vector<2x16xf32>
    %303 = arith.mulf %297, %302 : vector<2x16xf32>
    %c0_137 = arith.constant 0 : index
    %c0_138 = arith.constant 0 : index
    %304 = vector.load %arg7[%c0_137, %c0_138] : memref<2x16xf32, #tpu.memory_space<vmem>>, vector<2x16xf32>
    tpu.vector_store %arg7[%c0_137, %c0_138], %303 {strides = array<i32>} : memref<2x16xf32, #tpu.memory_space<vmem>>, vector<2x16xf32>,
    %c0_139 = arith.constant 0 : index
    %c0_140 = arith.constant 0 : index
    %305 = vector.load %arg8[%c0_139, %c0_140] : memref<2x16xf32, #tpu.memory_space<vmem>>, vector<2x16xf32>
    tpu.vector_store %arg8[%c0_139, %c0_140], %301 {strides = array<i32>} : memref<2x16xf32, #tpu.memory_space<vmem>>, vector<2x16xf32>,
    %306 = arith.index_cast %c7_i32 : i32 to index
    %c0_141 = arith.constant 0 : index
    %c0_142 = arith.constant 0 : index
    %307 = vector.load %arg6[%306, %c0_141, %c0_142] : memref<8x2x16xf32, #tpu.memory_space<vmem>>, vector<1x2x16xf32>
    %308 = vector.shape_cast %307 : vector<1x2x16xf32> to vector<2x16xf32>
    %309 = vector.shape_cast %303 : vector<2x16xf32> to vector<1x2x16xf32>
    tpu.vector_store %arg6[%306, %c0_141, %c0_142], %309 {strides = array<i32>} : memref<8x2x16xf32, #tpu.memory_space<vmem>>, vector<1x2x16xf32>,
    %c8_i32 = arith.constant 8 : i32
    %c0_143 = arith.constant 0 : index
    %c0_144 = arith.constant 0 : index
    %c0_145 = arith.constant 0 : index
    %310 = vector.load %arg6[%c0_143, %c0_144, %c0_145] : memref<8x2x16xf32, #tpu.memory_space<vmem>>, vector<8x2x16xf32>
    %c0_146 = arith.constant 0 : index
    %c0_147 = arith.constant 0 : index
    %c0_148 = arith.constant 0 : index
    %c0_149 = arith.constant 0 : index
    %311 = vector.load %arg3[%c0_146, %c0_147, %c0_148, %c0_149] : memref<1x8x2x16xf32, #tpu.memory_space<vmem>>, vector<1x8x2x16xf32>
    %312 = vector.shape_cast %311 : vector<1x8x2x16xf32> to vector<8x2x16xf32>
    %313 = vector.shape_cast %310 : vector<8x2x16xf32> to vector<1x8x2x16xf32>
    tpu.vector_store %arg3[%c0_146, %c0_147, %c0_148, %c0_149], %313 {strides = array<i32>} : memref<1x8x2x16xf32, #tpu.memory_space<vmem>>, vector<1x8x2x16xf32>,
    %c0_150 = arith.constant 0 : index
    %c0_151 = arith.constant 0 : index
    %314 = vector.load %arg7[%c0_150, %c0_151] : memref<2x16xf32, #tpu.memory_space<vmem>>, vector<2x16xf32>
    %c0_152 = arith.constant 0 : index
    %c0_153 = arith.constant 0 : index
    %c0_154 = arith.constant 0 : index
    %315 = vector.load %arg4[%c0_152, %c0_153, %c0_154] : memref<1x2x16xf32, #tpu.memory_space<vmem>>, vector<1x2x16xf32>
    %316 = vector.shape_cast %315 : vector<1x2x16xf32> to vector<2x16xf32>
    %317 = vector.shape_cast %314 : vector<2x16xf32> to vector<1x2x16xf32>
    tpu.vector_store %arg4[%c0_152, %c0_153, %c0_154], %317 {strides = array<i32>} : memref<1x2x16xf32, #tpu.memory_space<vmem>>, vector<1x2x16xf32>,
    %c0_155 = arith.constant 0 : index
    %c0_156 = arith.constant 0 : index
    %318 = vector.load %arg8[%c0_155, %c0_156] : memref<2x16xf32, #tpu.memory_space<vmem>>, vector<2x16xf32>
    %c0_157 = arith.constant 0 : index
    %c0_158 = arith.constant 0 : index
    %c0_159 = arith.constant 0 : index
    %319 = vector.load %arg5[%c0_157, %c0_158, %c0_159] : memref<1x2x16xf32, #tpu.memory_space<vmem>>, vector<1x2x16xf32>
    %320 = vector.shape_cast %319 : vector<1x2x16xf32> to vector<2x16xf32>
    %321 = vector.shape_cast %318 : vector<2x16xf32> to vector<1x2x16xf32>
    tpu.vector_store %arg5[%c0_157, %c0_158, %c0_159], %321 {strides = array<i32>} : memref<1x2x16xf32, #tpu.memory_space<vmem>>, vector<1x2x16xf32>,
    return
  }
  func.func @transform_0(%arg0: i32) -> (i32, i32, i32, i32) {
    %c0_i32 = arith.constant 0 : i32
    %c0_i32_0 = arith.constant 0 : i32
    %c0_i32_1 = arith.constant 0 : i32
    %c0_i32_2 = arith.constant 0 : i32
    return %arg0, %c0_i32, %c0_i32_0, %c0_i32_1 : i32, i32, i32, i32
  }
  func.func @transform_1(%arg0: i32) -> (i32, i32, i32) {
    %c0_i32 = arith.constant 0 : i32
    %c0_i32_0 = arith.constant 0 : i32
    %c0_i32_1 = arith.constant 0 : i32
    return %arg0, %c0_i32, %c0_i32_0 : i32, i32, i32
  }
  func.func @transform_2(%arg0: i32) -> (i32, i32, i32, i32) {
    %c0_i32 = arith.constant 0 : i32
    %c0_i32_0 = arith.constant 0 : i32
    %c0_i32_1 = arith.constant 0 : i32
    %c0_i32_2 = arith.constant 0 : i32
    return %arg0, %c0_i32, %c0_i32_0, %c0_i32_1 : i32, i32, i32, i32
  }
  func.func @transform_3(%arg0: i32) -> (i32, i32, i32) {
    %c0_i32 = arith.constant 0 : i32
    %c0_i32_0 = arith.constant 0 : i32
    %c0_i32_1 = arith.constant 0 : i32
    return %arg0, %c0_i32, %c0_i32_0 : i32, i32, i32
  }
  func.func @transform_4(%arg0: i32) -> (i32, i32, i32) {
    %c0_i32 = arith.constant 0 : i32
    %c0_i32_0 = arith.constant 0 : i32
    %c0_i32_1 = arith.constant 0 : i32
    return %arg0, %c0_i32, %c0_i32_0 : i32, i32, i32
  }
}

</mosaic_0001>

<bundles_post_ra>
// kernel: bilstm_forward.2
= control target key start
LH: loop header
LB: loop body
LE: loop exit
PB: predicated region body
PF: predicated region fallthrough
CT: control target
= control target key end

     0   :  { %vm33_vm0 = vcmask 130048   ;;  %vm115_vm1 = vcmask 523264   ;;  %s323_s1 = inlined_call_operand.vmem [shape: f32[16,64], index: 1, kind: input, shape index: {}]   ;;  %s324_s3 = inlined_call_operand.vmem [shape: f32[16,64], index: 3, kind: input, shape index: {}]   ;;  %s325_s0 = inlined_call_operand.vmem [shape: f32[16,16], index: 0, kind: input, shape index: {}]   ;;  %s326_s2 = inlined_call_operand.vmem [shape: f32[1,64], index: 2, kind: input, shape index: {}]   ;;  %s327_s4 = inlined_call_operand.vmem [shape: f32[1,64], index: 4, kind: input, shape index: {}]   ;;  %s328_s5 = inlined_call_operand.vmem [shape: f32[16,64], index: 5, kind: output, shape index: {0}]   ;;  %s329_s6 = inlined_call_operand.vmem [shape: f32[16,64], index: 6, kind: output, shape index: {1}]  }
   0x1   :  { %v24_v0 = vld [vmem:[%s323_s1] sm:$0xff]  ;;  %v25_v1 = vld [vmem:[%s323_s1 + $0x8] sm:$0xff] }
   0x2   :  { %v118_v2 = vld [vmem:[%s324_s3] sm:$0xff]  ;;  %v240_v3 = vpack.c.bf16 %v25_v1, %v24_v0  ;;  %v119_v4 = vld [vmem:[%s324_s3 + $0x8] sm:$0xff] }
   0x3   :  { %v22_v5 = vld [vmem:[%s325_s0] sm:$0xff]  ;;  %v244_v6 = vpack.c.bf16 %v119_v4, %v118_v2  ;;  %v23_v7 = vld [vmem:[%s325_s0 + $0x8] sm:$0xff] }
   0x4   :  { %230 = vmatprep.mubr.msk.f32.mxu0 %vm33_vm0, %v22_v5  ;;  %237 = vmatprep.mubr.msk.f32.mxu1 %vm33_vm0, %v22_v5  ;;  %v212_v8 = vld [vmem:[%s326_s2] ss:$0 sm:$0xff] }
   0x5   :  { %241 = vmatprep.subr.bf16.mxu0 %v240_v3  ;;  %245 = vmatprep.subr.bf16.mxu1 %v244_v6  ;;  %v215_v9 = vld [vmem:[%s327_s4] ss:$0 sm:$0xff] }
   0x6   :  { %243 = vmatpush3.bf16.msra.mxu0 %v240_v3  ;;  %247 = vmatpush3.bf16.msra.mxu1 %v244_v6 }
   0x9   :  { %231 = vmatmul.mubr.msk.f32.vlgmr.msra.gmra.mrb[0].mxu0 %vm33_vm0, %v23_v7  ;;  %238 = vmatmul.mubr.msk.f32.vlgmr.msra.gmra.mrb[0].mxu1 %vm33_vm0, %v23_v7 }
  0xdc   :  { %v232_v10 = vpop.f32.mrb[0].mxu0  ;;  %v239_v12 = vpop.f32.mrb[0].mxu1 }
  0xdd   :  { %v112_v11 = vadd.f32 %v232_v10, %v212_v8  ;;  %v106_v13 = vpop.f32.mrb[1].mxu0  ;;  %v199_v14 = vadd.f32 %v239_v12, %v215_v9  ;;  %v193_v16 = vpop.f32.mrb[1].mxu1 }
  0xde   :  { %v107_v15 = vadd.f32 %v212_v8, %v106_v13  ;;  %v194_v17 = vadd.f32 %v215_v9, %v193_v16 }
  0xdf   :  { %117 = vst.msk [vmem:[%s328_s5 + $0x8] sm:$0xff] %vm115_vm1, %v112_v11  ;;  %203 = vst.msk [vmem:[%s329_s6 + $0x8] sm:$0xff] %vm115_vm1, %v199_v14 }
  0xe0   :  { %116 = vst.msk [vmem:[%s328_s5] sm:$0xff] %vm115_vm1, %v107_v15  ;;  %202 = vst.msk [vmem:[%s329_s6] sm:$0xff] %vm115_vm1, %v194_v17 }

// kernel: bilstm_forward.3
= control target key start
LH: loop header
LB: loop body
LE: loop exit
PB: predicated region body
PF: predicated region fallthrough
CT: control target
= control target key end

     0   :  { %s1602_s15 = smov 0   ;;  %s1785_s0 = inlined_call_operand.vmem [shape: f32[2,8,2,64], index: 0, kind: input, shape index: {}]   ;;  %s1786_s1 = inlined_call_operand.vmem [shape: f32[2,16,64], index: 1, kind: input, shape index: {}]   ;;  %s1787_s2 = inlined_call_operand.vmem [shape: f32[2,8,2,16], index: 2, kind: output, shape index: {0}]   ;;  %s1788_s3 = inlined_call_operand.vmem [shape: f32[2,2,16], index: 3, kind: output, shape index: {1}]   ;;  %s1789_s4 = inlined_call_operand.vmem [shape: f32[2,2,16], index: 4, kind: output, shape index: {2}]  }
   0x1 LB: > { %s1336_s16 = sadd.s32 4294967295, %s1567_s15   ;;  %p1340_p0 = scmp.ge.s32.totalorder %s1567_s15, 1  ;;  %s1567_s15 = sphi %s1602_s15, %s15_s15  }
   0x2   : > { %p177_p1 = scmp.lt.s32.totalorder %s1567_s15, 3 }
   0x4   : > { %p178_p2 = pnand %p1340_p0, %p177_p1 }
   0x5   : > { %p216_p3 = scmp.lt.s32.totalorder (!%p178_p2), %s1336_s16, 1  ;;  %vm239_vm0 = vcmask (!%p178_p2), 123904   ;;  %v1569_v0 = vmov (!%p178_p2), 0.0|0.0   ;;  %v1570_v1 = vmov (!%p178_p2), 0.0   ;;  %vm1571_vm1 = vmmov (!%p178_p2), 0   ;;  %s1572_s24 = smov (!%p178_p2), 96  }
   0x6   : > { %181 = sbr.rel (%p178_p2) target bundleno = 5703 (0x1647), region = 28  ;;  %1457 = vmatprep.subr.bf16.mxu0 (!%p178_p2), %v1569_v0  ;;  %240 = vst.msk [vmem:[#allocation3] sm:$0x3] (!%p178_p2), %vm239_vm0, %v1570_v1  ;;  %241 = vst.msk [vmem:[#allocation4] sm:$0x3] (!%p178_p2), %vm239_vm0, %v1570_v1  ;;  %1405 = vmatprep.mubr.msk.f32.mxu0 (!%p178_p2), %vm1571_vm1, %v1570_v1  ;;  %vm246_vm2 = vcmask (!%p178_p2), 130048  }
   0x7   : > { %1460 = vmatprep.subr.bf16.mxu1 (!%p178_p2), %v1569_v0  ;;  %1412 = vmatprep.mubr.msk.f32.mxu1 (!%p178_p2), %vm1571_vm1, %v1570_v1  ;;  %s1573_s25 = smov (!%p178_p2), 16   ;;  %s1574_s26 = smov (!%p178_p2), 32  }
   0x8   : > { %s1575_s27 = smov (!%p178_p2), 112   ;;  %s1576_s28 = smov (!%p178_p2), 80  }
   0xd   : > { %s1791_s16 = smov (!%p216_p3, %s1336_s16), 1  ;;  %v245_v5 = vld [vmem:[#allocation3] sm:$0x3]  ;;  %v328_v11 = vld [vmem:[#allocation4] sm:$0x3] }
   0xe   : > { %s1623_s17 = sshll.u32 %s1791_s16, 4  ;;  %s1347_s6 = sshll.u32 %s1791_s16, 1 }
   0xf   : > { %s225_s20 = scalar_lea.vmem %s1786_s1, %s1623_s17  ;;  %s1644_s23 = scalar_lea.vmem %s1785_s0, %s1623_s17 }
  0x10   : > { %v242_v2 = vld [vmem:[%s225_s20] sm:$0xff]  ;;  %v243_v3 = vld [vmem:[%s225_s20 + $0x8] sm:$0xff]  ;;  %s1661_s5 = scalar_lea.vmem %s1787_s2, %s1623_s17  ;;  %s238_s9 = scalar_lea.vmem %s1789_s4, %s1347_s6 }
  0x11   : > { %v1629_v4 = vpack.c.bf16 %v243_v3, %v242_v2  ;;  %v244_v6 = vld [vmem:[%s1644_s23] sm:$0x3]  ;;  %v1351_v30 = vld [vmem:[%s1644_s23 + $0x2] sm:$0x3]  ;;  %v1354_v53 = vld [vmem:[%s1644_s23 + $0x4] sm:$0x3]  ;;  %s234_s12 = scalar_lea.vmem %s1788_s3, %s1347_s6 }
  0x13   : > { %1459 = vmatpush3.bf16.msra.mxu0 %v1629_v4  ;;  %1462 = vmatpush3.bf16.msra.mxu1 %v1629_v4 }
  0x14   : > { %1463 = vmatprep.subr.bf16.mxu0 %v1569_v0  ;;  %1466 = vmatprep.subr.bf16.mxu1 %v1569_v0 }
  0x16   : > { %1406 = vmatmul.mubr.msk.f32.vlgmr.msra.gmra.mrb[0].mxu0 %vm246_vm2, %v245_v5 }
  0x17   : > { %1465 = vmatpush3.bf16.msra.mxu0 %v1629_v4  ;;  %1419 = vmatprep.mubr.msk.f32.mxu0 %vm1571_vm1, %v1570_v1 }
  0x18   : > { %1469 = vmatprep.subr.bf16.mxu0 %v1569_v0 }
  0xe9   : > { %v316_v7 = vpop.f32.mrb[0].mxu0 }
  0xea   : > { %v320_v8 = vadd.f32 %v316_v7, %v244_v6  ;;  %v1407_v9 = vpop.f32.mrb[1].mxu0 }
  0xec   : > { %1497 = vtanh.f32 %v320_v8  ;;  %v1350_v12 = vmul.f32 -1.442695, %v320_v8 }
  0xee   : > { %1499 = vpow2.f32 %v1350_v12 }
  0xf6   : > { %v1498_v10 = vpop.eup %1497 }
  0xf7   : > { %335 = vrot.lane.b32.xlu0 %v1498_v10, %s1572_s24 }
  0xf8   : > { %v1500_v13 = vpop.eup %1499 }
  0xf9   : > { %v324_v14 = vadd.f32 1.0, %v1500_v13 }
  0xfb   : > { %330 = vrot.lane.b32.xlu0 %v328_v11, %s1573_s25  ;;  %1501 = vrcp.f32 %v324_v14 }
 0x105   : > { %v1502_v15 = vpop.eup %1501 }
 0x169   : > { %v336_v16 = vpop.permute.xlu0 %335 }
 0x16a   : > { %v338_v17 = vmul.f32 %v1502_v15, %v336_v16 }
 0x16c   : > { %340 = vrot.lane.b32.xlu1 %v338_v17, %s1573_s25 }
 0x16d   : > { %v331_v18 = vpop.permute.xlu0 %330 }
 0x16e   : > { %v333_v19 = vmul.f32 %v1502_v15, %v331_v18 }
 0x1de   : > { %v341_v20 = vpop.permute.xlu1 %340 }
 0x1df   : > { %v343_v21 = vadd.f32 %v341_v20, %v333_v19 }
 0x1e1   : > { %1503 = vtanh.f32 %v343_v21 }
 0x1eb   : > { %v1504_v22 = vpop.eup %1503 }
 0x1ec   : > { %346 = vrot.lane.b32.xlu1 %v1504_v22, %s1574_s26 }
 0x1f0   : > { %356 = vrot.lane.b32.xlu1 %v343_v21, %s1575_s27 }
 0x25e   : > { %v347_v23 = vpop.permute.xlu1 %346 }
 0x25f   : > { %v349_v24 = vmul.f32 %v1502_v15, %v347_v23  ;;  %v1357_v15 = vld [vmem:[%s1644_s23 + $0x6] sm:$0x3] }
 0x261   : > { %351 = vrot.lane.b32.xlu0 %v349_v24, %s1576_s28 }
 0x262   : > { %v357_v25 = vpop.permute.xlu1 %356 }
 0x263   : > { %359 = vst.msk [vmem:[#allocation4] sm:$0x3] %vm239_vm0, %v357_v25 }
 0x26a   : > { %v445_v26 = vld [vmem:[#allocation4] sm:$0x3] }
 0x26b   : > { %447 = vrot.lane.b32.xlu1 %v445_v26, %s1573_s25 }
 0x2d3   : > { %v352_v27 = vpop.permute.xlu0 %351 }
 0x2d4   : > { %354 = vst.msk [vmem:[#allocation3] sm:$0x3] %vm239_vm0, %v352_v27  ;;  %360 = vst.msk [vmem:[#allocation2] sm:$0x3] %vm239_vm0, %v352_v27 }
 0x2db   : > { %v1187_v28 = vld [vmem:[#allocation2] sm:$0x3]  ;;  %v363_v29 = vld [vmem:[#allocation3] sm:$0x3] }
 0x2dc   : > { %1195 = vst.msk [vmem:[%s1661_s5] sm:$0x3] %vm239_vm0, %v1187_v28  ;;  %1413 = vmatmul.mubr.msk.f32.vlgmr.msra.gmra.mrb[0].mxu1 %vm246_vm2, %v363_v29 }
 0x2dd   : > { %1468 = vmatpush3.bf16.msra.mxu1 %v1629_v4  ;;  %1426 = vmatprep.mubr.msk.f32.mxu1 %vm1571_vm1, %v1570_v1  ;;  %v448_v41 = vpop.permute.xlu1 %447 }
 0x2de   : > { %1472 = vmatprep.subr.bf16.mxu1 %v1569_v0 }
 0x3af   : > { %v433_v31 = vpop.f32.mrb[0].mxu1 }
 0x3b0   : > { %v437_v32 = vadd.f32 %v1351_v30, %v433_v31  ;;  %v1414_v33 = vpop.f32.mrb[1].mxu1 }
 0x3b2   : > { %1505 = vtanh.f32 %v437_v32  ;;  %v1353_v35 = vmul.f32 -1.442695, %v437_v32 }
 0x3b4   : > { %1507 = vpow2.f32 %v1353_v35 }
 0x3bc   : > { %v1506_v34 = vpop.eup %1505 }
 0x3bd   : > { %452 = vrot.lane.b32.xlu0 %v1506_v34, %s1572_s24 }
 0x3be   : > { %v1508_v36 = vpop.eup %1507 }
 0x3bf   : > { %v441_v37 = vadd.f32 1.0, %v1508_v36 }
 0x3c1   : > { %1509 = vrcp.f32 %v441_v37  ;;  %v1360_v37 = vld [vmem:[%s1644_s23 + $0x8] sm:$0x3] }
 0x3cb   : > { %v1510_v38 = vpop.eup %1509 }
 0x3cc   : > { %v450_v42 = vmul.f32 %v1510_v38, %v448_v41 }
 0x42f   : > { %v453_v39 = vpop.permute.xlu0 %452 }
 0x430   : > { %v455_v40 = vmul.f32 %v1510_v38, %v453_v39 }
 0x432   : > { %457 = vrot.lane.b32.xlu0 %v455_v40, %s1573_s25 }
 0x4a4   : > { %v458_v43 = vpop.permute.xlu0 %457 }
 0x4a5   : > { %v460_v44 = vadd.f32 %v458_v43, %v450_v42 }
 0x4a7   : > { %1511 = vtanh.f32 %v460_v44 }
 0x4b1   : > { %v1512_v45 = vpop.eup %1511 }
 0x4b2   : > { %463 = vrot.lane.b32.xlu1 %v1512_v45, %s1574_s26 }
 0x4b6   : > { %473 = vrot.lane.b32.xlu1 %v460_v44, %s1575_s27 }
 0x524   : > { %v464_v46 = vpop.permute.xlu1 %463 }
 0x525   : > { %v466_v47 = vmul.f32 %v1510_v38, %v464_v46 }
 0x527   : > { %468 = vrot.lane.b32.xlu0 %v466_v47, %s1576_s28 }
 0x528   : > { %v474_v48 = vpop.permute.xlu1 %473 }
 0x529   : > { %476 = vst.msk [vmem:[#allocation4] sm:$0x3] %vm239_vm0, %v474_v48 }
 0x530   : > { %v563_v49 = vld [vmem:[#allocation4] sm:$0x3] }
 0x531   : > { %565 = vrot.lane.b32.xlu1 %v563_v49, %s1573_s25 }
 0x599   : > { %v469_v50 = vpop.permute.xlu0 %468 }
 0x59a   : > { %471 = vst.msk [vmem:[#allocation3] sm:$0x3] %vm239_vm0, %v469_v50  ;;  %478 = vst.msk [vmem:[#allocation2 + $0x2] sm:$0x3] %vm239_vm0, %v469_v50 }
 0x5a1   : > { %v1188_v51 = vld [vmem:[#allocation2 + $0x2] sm:$0x3]  ;;  %v481_v52 = vld [vmem:[#allocation3] sm:$0x3] }
 0x5a2   : > { %1196 = vst.msk [vmem:[%s1661_s5 + $0x2] sm:$0x3] %vm239_vm0, %v1188_v51  ;;  %1420 = vmatmul.mubr.msk.f32.vlgmr.msra.gmra.mrb[2].mxu0 %vm246_vm2, %v481_v52 }
 0x5a3   : > { %1471 = vmatpush3.bf16.msra.mxu0 %v1629_v4  ;;  %1433 = vmatprep.mubr.msk.f32.mxu0 %vm1571_vm1, %v1570_v1  ;;  %v566_v2 = vpop.permute.xlu1 %565 }
 0x5a4   : > { %1475 = vmatprep.subr.bf16.mxu0 %v1569_v0 }
 0x675   : > { %v551_v54 = vpop.f32.mrb[2].mxu0 }
 0x676   : > { %v555_v55 = vadd.f32 %v1354_v53, %v551_v54  ;;  %v1421_v56 = vpop.f32.mrb[3].mxu0 }
 0x678   : > { %1513 = vtanh.f32 %v555_v55  ;;  %v1356_v58 = vmul.f32 -1.442695, %v555_v55 }
 0x67a   : > { %1515 = vpow2.f32 %v1356_v58 }
 0x682   : > { %v1514_v57 = vpop.eup %1513 }
 0x683   : > { %570 = vrot.lane.b32.xlu0 %v1514_v57, %s1572_s24 }
 0x684   : > { %v1516_v59 = vpop.eup %1515 }
 0x685   : > { %v559_v60 = vadd.f32 1.0, %v1516_v59 }
 0x687   : > { %1517 = vrcp.f32 %v559_v60  ;;  %v1363_v60 = vld [vmem:[%s1644_s23 + $0xa] sm:$0x3] }
 0x691   : > { %v1518_v61 = vpop.eup %1517 }
 0x692   : > { %v568_v3 = vmul.f32 %v1518_v61, %v566_v2 }
 0x6f5   : > { %v571_v62 = vpop.permute.xlu0 %570 }
 0x6f6   : > { %v573_v63 = vmul.f32 %v1518_v61, %v571_v62 }
 0x6f8   : > { %575 = vrot.lane.b32.xlu0 %v573_v63, %s1573_s25 }
 0x76a   : > { %v576_v5 = vpop.permute.xlu0 %575 }
 0x76b   : > { %v578_v6 = vadd.f32 %v576_v5, %v568_v3 }
 0x76d   : > { %1519 = vtanh.f32 %v578_v6 }
 0x777   : > { %v1520_v7 = vpop.eup %1519 }
 0x778   : > { %581 = vrot.lane.b32.xlu1 %v1520_v7, %s1574_s26 }
 0x77c   : > { %591 = vrot.lane.b32.xlu1 %v578_v6, %s1575_s27 }
 0x7ea   : > { %v582_v8 = vpop.permute.xlu1 %581 }
 0x7eb   : > { %v584_v9 = vmul.f32 %v1518_v61, %v582_v8 }
 0x7ed   : > { %586 = vrot.lane.b32.xlu0 %v584_v9, %s1576_s28 }
 0x7ee   : > { %v592_v10 = vpop.permute.xlu1 %591 }
 0x7ef   : > { %594 = vst.msk [vmem:[#allocation4] sm:$0x3] %vm239_vm0, %v592_v10 }
 0x7f6   : > { %v681_v11 = vld [vmem:[#allocation4] sm:$0x3] }
 0x7f7   : > { %683 = vrot.lane.b32.xlu1 %v681_v11, %s1573_s25 }
 0x85f   : > { %v587_v12 = vpop.permute.xlu0 %586 }
 0x860   : > { %589 = vst.msk [vmem:[#allocation3] sm:$0x3] %vm239_vm0, %v587_v12  ;;  %596 = vst.msk [vmem:[#allocation2 + $0x4] sm:$0x3] %vm239_vm0, %v587_v12 }
 0x867   : > { %v1189_v13 = vld [vmem:[#allocation2 + $0x4] sm:$0x3]  ;;  %v599_v14 = vld [vmem:[#allocation3] sm:$0x3] }
 0x868   : > { %1197 = vst.msk [vmem:[%s1661_s5 + $0x4] sm:$0x3] %vm239_vm0, %v1189_v13  ;;  %1427 = vmatmul.mubr.msk.f32.vlgmr.msra.gmra.mrb[2].mxu1 %vm246_vm2, %v599_v14 }
 0x869   : > { %1474 = vmatpush3.bf16.msra.mxu1 %v1629_v4  ;;  %1440 = vmatprep.mubr.msk.f32.mxu1 %vm1571_vm1, %v1570_v1  ;;  %v684_v26 = vpop.permute.xlu1 %683 }
 0x86a   : > { %1478 = vmatprep.subr.bf16.mxu1 %v1569_v0 }
 0x93b   : > { %v669_v16 = vpop.f32.mrb[2].mxu1 }
 0x93c   : > { %v673_v17 = vadd.f32 %v1357_v15, %v669_v16  ;;  %v1428_v18 = vpop.f32.mrb[3].mxu1 }
 0x93e   : > { %1521 = vtanh.f32 %v673_v17  ;;  %v1359_v20 = vmul.f32 -1.442695, %v673_v17 }
 0x940   : > { %1523 = vpow2.f32 %v1359_v20  ;;  %v1366_v20 = vld [vmem:[%s1644_s23 + $0xc] sm:$0x3] }
 0x948   : > { %v1522_v19 = vpop.eup %1521 }
 0x949   : > { %688 = vrot.lane.b32.xlu0 %v1522_v19, %s1572_s24 }
 0x94a   : > { %v1524_v21 = vpop.eup %1523 }
 0x94b   : > { %v677_v22 = vadd.f32 1.0, %v1524_v21 }
 0x94d   : > { %1525 = vrcp.f32 %v677_v22 }
 0x957   : > { %v1526_v23 = vpop.eup %1525 }
 0x958   : > { %v686_v0 = vmul.f32 %v1526_v23, %v684_v26 }
 0x9bb   : > { %v689_v24 = vpop.permute.xlu0 %688 }
 0x9bc   : > { %v691_v25 = vmul.f32 %v1526_v23, %v689_v24 }
 0x9be   : > { %693 = vrot.lane.b32.xlu0 %v691_v25, %s1573_s25 }
 0xa30   : > { %v694_v27 = vpop.permute.xlu0 %693 }
 0xa31   : > { %v696_v28 = vadd.f32 %v694_v27, %v686_v0 }
 0xa33   : > { %1527 = vtanh.f32 %v696_v28 }
 0xa3d   : > { %v1528_v29 = vpop.eup %1527 }
 0xa3e   : > { %699 = vrot.lane.b32.xlu1 %v1528_v29, %s1574_s26 }
 0xa42   : > { %709 = vrot.lane.b32.xlu1 %v696_v28, %s1575_s27 }
 0xab0   : > { %v700_v30 = vpop.permute.xlu1 %699 }
 0xab1   : > { %v702_v31 = vmul.f32 %v1526_v23, %v700_v30 }
 0xab3   : > { %704 = vrot.lane.b32.xlu0 %v702_v31, %s1576_s28 }
 0xab4   : > { %v710_v32 = vpop.permute.xlu1 %709 }
 0xab5   : > { %712 = vst.msk [vmem:[#allocation4] sm:$0x3] %vm239_vm0, %v710_v32 }
 0xabc   : > { %v799_v33 = vld [vmem:[#allocation4] sm:$0x3] }
 0xabd   : > { %801 = vrot.lane.b32.xlu1 %v799_v33, %s1573_s25 }
 0xb25   : > { %v705_v34 = vpop.permute.xlu0 %704 }
 0xb26   : > { %707 = vst.msk [vmem:[#allocation3] sm:$0x3] %vm239_vm0, %v705_v34  ;;  %714 = vst.msk [vmem:[#allocation2 + $0x6] sm:$0x3] %vm239_vm0, %v705_v34 }
 0xb2d   : > { %v1190_v35 = vld [vmem:[#allocation2 + $0x6] sm:$0x3]  ;;  %v717_v36 = vld [vmem:[#allocation3] sm:$0x3] }
 0xb2e   : > { %1198 = vst.msk [vmem:[%s1661_s5 + $0x6] sm:$0x3] %vm239_vm0, %v1190_v35  ;;  %1434 = vmatmul.mubr.msk.f32.vlgmr.msra.gmra.mrb[4].mxu0 %vm246_vm2, %v717_v36 }
 0xb2f   : > { %1477 = vmatpush3.bf16.msra.mxu0 %v1629_v4  ;;  %1447 = vmatprep.mubr.msk.f32.mxu0 %vm1571_vm1, %v1570_v1  ;;  %v802_v48 = vpop.permute.xlu1 %801 }
 0xc01   : > { %v787_v38 = vpop.f32.mrb[4].mxu0 }
 0xc02   : > { %v791_v39 = vadd.f32 %v1360_v37, %v787_v38  ;;  %v1435_v40 = vpop.f32.mrb[5].mxu0 }
 0xc04   : > { %1529 = vtanh.f32 %v791_v39  ;;  %v1362_v42 = vmul.f32 -1.442695, %v791_v39 }
 0xc06   : > { %1531 = vpow2.f32 %v1362_v42  ;;  %v1369_v42 = vld [vmem:[%s1644_s23 + $0xe] sm:$0x3] }
 0xc0e   : > { %v1530_v41 = vpop.eup %1529 }
 0xc0f   : > { %806 = vrot.lane.b32.xlu0 %v1530_v41, %s1572_s24 }
 0xc10   : > { %v1532_v43 = vpop.eup %1531 }
 0xc11   : > { %v795_v44 = vadd.f32 1.0, %v1532_v43 }
 0xc13   : > { %1533 = vrcp.f32 %v795_v44 }
 0xc1d   : > { %v1534_v45 = vpop.eup %1533 }
 0xc1e   : > { %v804_v49 = vmul.f32 %v1534_v45, %v802_v48 }
 0xc81   : > { %v807_v46 = vpop.permute.xlu0 %806 }
 0xc82   : > { %v809_v47 = vmul.f32 %v1534_v45, %v807_v46 }
 0xc84   : > { %811 = vrot.lane.b32.xlu0 %v809_v47, %s1573_s25 }
 0xcf6   : > { %v812_v50 = vpop.permute.xlu0 %811 }
 0xcf7   : > { %v814_v51 = vadd.f32 %v812_v50, %v804_v49 }
 0xcf9   : > { %1535 = vtanh.f32 %v814_v51 }
 0xd03   : > { %v1536_v52 = vpop.eup %1535 }
 0xd04   : > { %817 = vrot.lane.b32.xlu1 %v1536_v52, %s1574_s26 }
 0xd08   : > { %827 = vrot.lane.b32.xlu1 %v814_v51, %s1575_s27 }
 0xd76   : > { %v818_v53 = vpop.permute.xlu1 %817 }
 0xd77   : > { %v820_v54 = vmul.f32 %v1534_v45, %v818_v53 }
 0xd79   : > { %822 = vrot.lane.b32.xlu0 %v820_v54, %s1576_s28 }
 0xd7a   : > { %v828_v55 = vpop.permute.xlu1 %827 }
 0xd7b   : > { %830 = vst.msk [vmem:[#allocation4] sm:$0x3] %vm239_vm0, %v828_v55 }
 0xd82   : > { %v917_v56 = vld [vmem:[#allocation4] sm:$0x3] }
 0xd83   : > { %919 = vrot.lane.b32.xlu1 %v917_v56, %s1573_s25 }
 0xdeb   : > { %v823_v57 = vpop.permute.xlu0 %822 }
 0xdec   : > { %825 = vst.msk [vmem:[#allocation3] sm:$0x3] %vm239_vm0, %v823_v57  ;;  %832 = vst.msk [vmem:[#allocation2 + $0x8] sm:$0x3] %vm239_vm0, %v823_v57 }
 0xdf3   : > { %v1191_v58 = vld [vmem:[#allocation2 + $0x8] sm:$0x3]  ;;  %v835_v59 = vld [vmem:[#allocation3] sm:$0x3] }
 0xdf4   : > { %1199 = vst.msk [vmem:[%s1661_s5 + $0x8] sm:$0x3] %vm239_vm0, %v1191_v58  ;;  %1441 = vmatmul.mubr.msk.f32.vlgmr.msra.gmra.mrb[4].mxu1 %vm246_vm2, %v835_v59 }
 0xdf5   : > { %1480 = vmatpush3.bf16.msra.mxu1 %v1629_v4  ;;  %1454 = vmatprep.mubr.msk.f32.mxu1 %vm1571_vm1, %v1570_v1  ;;  %v920_v4 = vpop.permute.xlu1 %919 }
 0xec7   : > { %v905_v61 = vpop.f32.mrb[4].mxu1 }
 0xec8   : > { %v909_v62 = vadd.f32 %v1363_v60, %v905_v61  ;;  %v1442_v63 = vpop.f32.mrb[5].mxu1 }
 0xeca   : > { %1537 = vtanh.f32 %v909_v62  ;;  %v1365_v3 = vmul.f32 -1.442695, %v909_v62 }
 0xecc   : > { %1539 = vpow2.f32 %v1365_v3 }
 0xed4   : > { %v1538_v2 = vpop.eup %1537 }
 0xed5   : > { %924 = vrot.lane.b32.xlu0 %v1538_v2, %s1572_s24 }
 0xed6   : > { %v1540_v5 = vpop.eup %1539 }
 0xed7   : > { %v913_v6 = vadd.f32 1.0, %v1540_v5 }
 0xed9   : > { %1541 = vrcp.f32 %v913_v6 }
 0xee3   : > { %v1542_v7 = vpop.eup %1541 }
 0xee4   : > { %v922_v1 = vmul.f32 %v1542_v7, %v920_v4 }
 0xf47   : > { %v925_v8 = vpop.permute.xlu0 %924 }
 0xf48   : > { %v927_v9 = vmul.f32 %v1542_v7, %v925_v8 }
 0xf4a   : > { %929 = vrot.lane.b32.xlu0 %v927_v9, %s1573_s25 }
 0xfbc   : > { %v930_v10 = vpop.permute.xlu0 %929 }
 0xfbd   : > { %v932_v11 = vadd.f32 %v930_v10, %v922_v1 }
 0xfbf   : > { %1543 = vtanh.f32 %v932_v11 }
 0xfc9   : > { %v1544_v12 = vpop.eup %1543 }
 0xfca   : > { %935 = vrot.lane.b32.xlu1 %v1544_v12, %s1574_s26 }
 0xfce   : > { %945 = vrot.lane.b32.xlu1 %v932_v11, %s1575_s27 }
0x103c   : > { %v936_v13 = vpop.permute.xlu1 %935 }
0x103d   : > { %v938_v14 = vmul.f32 %v1542_v7, %v936_v13 }
0x103f   : > { %940 = vrot.lane.b32.xlu0 %v938_v14, %s1576_s28 }
0x1040   : > { %v946_v15 = vpop.permute.xlu1 %945 }
0x1041   : > { %948 = vst.msk [vmem:[#allocation4] sm:$0x3] %vm239_vm0, %v946_v15 }
0x1048   : > { %v1035_v16 = vld [vmem:[#allocation4] sm:$0x3] }
0x1049   : > { %1037 = vrot.lane.b32.xlu1 %v1035_v16, %s1573_s25 }
0x10b1   : > { %v941_v17 = vpop.permute.xlu0 %940 }
0x10b2   : > { %943 = vst.msk [vmem:[#allocation3] sm:$0x3] %vm239_vm0, %v941_v17  ;;  %950 = vst.msk [vmem:[#allocation2 + $0xa] sm:$0x3] %vm239_vm0, %v941_v17 }
0x10b9   : > { %v1192_v18 = vld [vmem:[#allocation2 + $0xa] sm:$0x3]  ;;  %v953_v19 = vld [vmem:[#allocation3] sm:$0x3] }
0x10ba   : > { %1200 = vst.msk [vmem:[%s1661_s5 + $0xa] sm:$0x3] %vm239_vm0, %v1192_v18  ;;  %1448 = vmatmul.mubr.msk.f32.vlgmr.msra.gmra.mrb[6].mxu0 %vm246_vm2, %v953_v19 }
0x10bb   : > { %v1038_v30 = vpop.permute.xlu1 %1037 }
0x118d   : > { %v1023_v21 = vpop.f32.mrb[6].mxu0 }
0x118e   : > { %v1027_v22 = vadd.f32 %v1366_v20, %v1023_v21  ;;  %v1449_v23 = vpop.f32.mrb[7].mxu0 }
0x1190   : > { %1545 = vtanh.f32 %v1027_v22  ;;  %v1368_v25 = vmul.f32 -1.442695, %v1027_v22 }
0x1192   : > { %1547 = vpow2.f32 %v1368_v25 }
0x119a   : > { %v1546_v24 = vpop.eup %1545 }
0x119b   : > { %1042 = vrot.lane.b32.xlu0 %v1546_v24, %s1572_s24 }
0x119c   : > { %v1548_v26 = vpop.eup %1547 }
0x119d   : > { %v1031_v0 = vadd.f32 1.0, %v1548_v26 }
0x119f   : > { %1549 = vrcp.f32 %v1031_v0 }
0x11a9   : > { %v1550_v27 = vpop.eup %1549 }
0x11aa   : > { %v1040_v31 = vmul.f32 %v1550_v27, %v1038_v30 }
0x120d   : > { %v1043_v28 = vpop.permute.xlu0 %1042 }
0x120e   : > { %v1045_v29 = vmul.f32 %v1550_v27, %v1043_v28 }
0x1210   : > { %1047 = vrot.lane.b32.xlu0 %v1045_v29, %s1573_s25 }
0x1282   : > { %v1048_v32 = vpop.permute.xlu0 %1047 }
0x1283   : > { %v1050_v33 = vadd.f32 %v1048_v32, %v1040_v31 }
0x1285   : > { %1551 = vtanh.f32 %v1050_v33 }
0x128f   : > { %v1552_v34 = vpop.eup %1551 }
0x1290   : > { %1053 = vrot.lane.b32.xlu1 %v1552_v34, %s1574_s26 }
0x1294   : > { %1063 = vrot.lane.b32.xlu1 %v1050_v33, %s1575_s27 }
0x1302   : > { %v1054_v35 = vpop.permute.xlu1 %1053 }
0x1303   : > { %v1056_v36 = vmul.f32 %v1550_v27, %v1054_v35 }
0x1305   : > { %1058 = vrot.lane.b32.xlu0 %v1056_v36, %s1576_s28 }
0x1306   : > { %v1064_v37 = vpop.permute.xlu1 %1063 }
0x1307   : > { %1066 = vst.msk [vmem:[#allocation4] sm:$0x3] %vm239_vm0, %v1064_v37 }
0x130e   : > { %v1153_v38 = vld [vmem:[#allocation4] sm:$0x3] }
0x130f   : > { %1155 = vrot.lane.b32.xlu1 %v1153_v38, %s1573_s25 }
0x1377   : > { %v1059_v39 = vpop.permute.xlu0 %1058 }
0x1378   : > { %1061 = vst.msk [vmem:[#allocation3] sm:$0x3] %vm239_vm0, %v1059_v39  ;;  %1068 = vst.msk [vmem:[#allocation2 + $0xc] sm:$0x3] %vm239_vm0, %v1059_v39 }
0x137f   : > { %v1193_v40 = vld [vmem:[#allocation2 + $0xc] sm:$0x3]  ;;  %v1071_v41 = vld [vmem:[#allocation3] sm:$0x3] }
0x1380   : > { %1201 = vst.msk [vmem:[%s1661_s5 + $0xc] sm:$0x3] %vm239_vm0, %v1193_v40  ;;  %1455 = vmatmul.mubr.msk.f32.vlgmr.msra.gmra.mrb[6].mxu1 %vm246_vm2, %v1071_v41 }
0x1381   : > { %v1156_v53 = vpop.permute.xlu1 %1155 }
0x1453   : > { %v1141_v43 = vpop.f32.mrb[6].mxu1 }
0x1454   : > { %v1145_v44 = vadd.f32 %v1369_v42, %v1141_v43  ;;  %v1456_v45 = vpop.f32.mrb[7].mxu1 }
0x1456   : > { %1553 = vtanh.f32 %v1145_v44  ;;  %v1371_v47 = vmul.f32 -1.442695, %v1145_v44 }
0x1458   : > { %1555 = vpow2.f32 %v1371_v47 }
0x1460   : > { %v1554_v46 = vpop.eup %1553 }
0x1461   : > { %1160 = vrot.lane.b32.xlu0 %v1554_v46, %s1572_s24 }
0x1462   : > { %v1556_v48 = vpop.eup %1555 }
0x1463   : > { %v1149_v49 = vadd.f32 1.0, %v1556_v48 }
0x1465   : > { %1557 = vrcp.f32 %v1149_v49 }
0x146f   : > { %v1558_v50 = vpop.eup %1557 }
0x1470   : > { %v1158_v54 = vmul.f32 %v1558_v50, %v1156_v53 }
0x14d3   : > { %v1161_v51 = vpop.permute.xlu0 %1160 }
0x14d4   : > { %v1163_v52 = vmul.f32 %v1558_v50, %v1161_v51 }
0x14d6   : > { %1165 = vrot.lane.b32.xlu0 %v1163_v52, %s1573_s25 }
0x1548   : > { %v1166_v55 = vpop.permute.xlu0 %1165 }
0x1549   : > { %v1168_v56 = vadd.f32 %v1166_v55, %v1158_v54 }
0x154b   : > { %1559 = vtanh.f32 %v1168_v56 }
0x1555   : > { %v1560_v57 = vpop.eup %1559 }
0x1556   : > { %1171 = vrot.lane.b32.xlu1 %v1560_v57, %s1574_s26 }
0x155a   : > { %1181 = vrot.lane.b32.xlu1 %v1168_v56, %s1575_s27 }
0x15c8   : > { %v1172_v58 = vpop.permute.xlu1 %1171 }
0x15c9   : > { %v1174_v59 = vmul.f32 %v1558_v50, %v1172_v58 }
0x15cb   : > { %1176 = vrot.lane.b32.xlu0 %v1174_v59, %s1576_s28 }
0x15cc   : > { %v1182_v60 = vpop.permute.xlu1 %1181 }
0x15cd   : > { %1184 = vst.msk [vmem:[#allocation4] sm:$0x3] %vm239_vm0, %v1182_v60 }
0x15d4   : > { %v1205_v61 = vld [vmem:[#allocation4] sm:$0x3] }
0x15d5   : > { %1206 = vst.msk [vmem:[%s238_s9] sm:$0x3] %vm239_vm0, %v1205_v61 }
0x163d   : > { %v1177_v62 = vpop.permute.xlu0 %1176 }
0x163e   : > { %1179 = vst.msk [vmem:[#allocation3] sm:$0x3] %vm239_vm0, %v1177_v62  ;;  %1186 = vst.msk [vmem:[#allocation2 + $0xe] sm:$0x3] %vm239_vm0, %v1177_v62 }
0x1645   : > { %v1194_v63 = vld [vmem:[#allocation2 + $0xe] sm:$0x3]  ;;  %v1203_v2 = vld [vmem:[#allocation3] sm:$0x3] }
0x1646   : > { %1202 = vst.msk [vmem:[%s1661_s5 + $0xe] sm:$0x3] %vm239_vm0, %v1194_v63  ;;  %1204 = vst.msk [vmem:[%s234_s12] sm:$0x3] %vm239_vm0, %v1203_v2 }
0x1647 PF: > { %s15_s15 = sadd.s32 1, %s1567_s15  }
0x1648   : > { %p12_p4 = scmp.ge.s32.totalorder %s15_s15, 4  }
0x164a   :  { %14 = sbr.rel (!%p12_p4) target bundleno = 1 (0x1), region = 99 }

</bundles_post_ra>
